<compile_context>
chip_gen: v7x
topology: tpu7x:2x2x1
jax: 0.10.0
libtpu: 0.0.40
codegen_flags: <defaults>
</compile_context>

<pallas_src>
import numpy as np
import jax
import jax.numpy as jnp
from jax import lax
from jax.experimental import pallas as pl
from jax.experimental.pallas import tpu as pltpu

EPS = 1e-5
LANE = 128


def _round_up(x, m):
    return (x + m - 1) // m * m


def _shift_cols(x, d, width):
    """out[:, j] = x[:, j + d], zero-filled where j + d falls outside [0, width). d static."""
    if d == 0:
        return x
    c = x.shape[0]
    if d > 0:
        return jnp.concatenate([x[:, d:], jnp.zeros((c, d), x.dtype)], axis=1)
    return jnp.concatenate([jnp.zeros((c, -d), x.dtype), x[:, :width + d]], axis=1)


# ---------------------------------------------------------------------------
# Pallas kernels
# ---------------------------------------------------------------------------
def _make_down_kernel(cin, wrow):
    # stride-2 3x3 conv via space-to-depth phases: tap (ki,kj) reads phase (ki%2, kj%2)
    # lane-shifted by (ki//2)*wrow + (kj//2).
    taps = []
    for t in range(9):
        ki, kj = t // 3, t % 3
        taps.append(((ki % 2) * 2 + (kj % 2), (ki // 2) * wrow + (kj // 2)))

    def kernel(x_ref, w_ref, b_ref, m_ref, o_ref):
        bw = x_ref.shape[-1]
        phases = [x_ref[p] for p in range(4)]                  # each (cin, bw) bf16
        acc = None
        for t, (ph, d) in enumerate(taps):
            xt = _shift_cols(phases[ph], d, bw)
            part = jnp.dot(w_ref[t], xt, preferred_element_type=jnp.float32)
            acc = part if acc is None else acc + part
        y = (acc + b_ref[...]) * m_ref[...]                    # bias + interior mask (f32)
        o_ref[...] = y.astype(o_ref.dtype)

    return kernel


def _make_irb_kernel(wrow):
    # stride-1 3x3 conv on the flattened padded frame: tap (ki,kj) -> lane shift
    # ki*wrow + kj - (wrow+1).
    shifts = [ki * wrow + kj - (wrow + 1) for ki in range(3) for kj in range(3)]

    def conv9(x, w_ref, bw):
        acc = None
        for t, d in enumerate(shifts):
            xt = _shift_cols(x, d, bw)
            part = jnp.dot(w_ref[t], xt, preferred_element_type=jnp.float32)
            acc = part if acc is None else acc + part
        return acc                                             # (cout, bw) f32

    def kernel(x_ref, w1_ref, s1_ref, w2_ref, s2_ref, m_ref, o_ref):
        bw = x_ref.shape[-1]
        x = x_ref[...]                                         # (cout, bw) bf16
        m = m_ref[...]                                         # (1, bw) f32
        # conv1 + folded BN + ReLU; `mid` stays in VMEM/vregs (never hits HBM).
        mid = jnp.maximum(conv9(x, w1_ref, bw) + s1_ref[...], 0.0) * m
        mid = mid.astype(x.dtype)
        # conv2 + folded BN + residual + ReLU + interior mask.
        y = conv9(mid, w2_ref, bw) + s2_ref[...] + x.astype(jnp.float32)
        o_ref[...] = (jnp.maximum(y, 0.0) * m).astype(o_ref.dtype)

    return kernel


# ---------------------------------------------------------------------------
# Wrapper-side layout plumbing (plain JAX, one-shot, small)
# ---------------------------------------------------------------------------
def _prep_w(w_hwio, scale=None):
    """(3,3,Cin,Cout) [* per-Cout BN scale] -> (9, Cout, Cin) bf16."""
    w = w_hwio if scale is None else w_hwio * scale[None, None, None, :]
    cin, cout = w.shape[2], w.shape[3]
    return jnp.transpose(w, (0, 1, 3, 2)).reshape(9, cout, cin).astype(jnp.bfloat16)


def _build_phases(x_cbdh, Do, Ho, wrow, fp):
    """(C,B,D,H) -> (4, C, B*FP): space-to-depth phases embedded in the output-frame layout."""
    C, B, D, H = x_cbdh.shape
    xp = jnp.pad(x_cbdh, ((0, 0), (0, 0), (1, 1), (1, 1)))
    f1 = (Do + 2) * wrow
    frames = []
    for pi in range(2):
        for pj in range(2):
            ph = xp[:, :, pi::2, pj::2]                        # (C, B, Do+1, Ho+1)
            fr = jnp.zeros((C, B, Do + 2, wrow), x_cbdh.dtype)
            fr = fr.at[:, :, 1:Do + 2, 1:Ho + 2].set(ph)
            frames.append(fr.reshape(C, B, f1))
    st = jnp.stack(frames, axis=0)                             # (4, C, B, F1)
    st = jnp.pad(st, ((0, 0), (0, 0), (0, 0), (0, fp - f1)))
    return st.reshape(4, C, B * fp)


def _interior_mask(B, Do, Ho, wrow, fp):
    m = np.zeros((fp,), np.float32)
    for a in range(1, Do + 1):
        m[a * wrow + 1:a * wrow + 1 + Ho] = 1.0
    return jnp.asarray(np.tile(m, B)[None, :])                 # (1, B*FP) f32


def _pick_group(b, fp, target_cols=2048):
    """Largest divisor-of-B group with group*FP <= target, keeping >=2 grid tiles (megacore)."""
    g = 1
    for cand in range(1, b + 1):
        if b % cand == 0 and cand * fp <= max(target_cols, fp):
            g = cand
    if b // g < 2:
        divs = [c for c in range(1, b) if b % c == 0 and b // c >= 2]
        if divs:
            g = divs[-1]
    return g


# ---------------------------------------------------------------------------
# Module forward
# ---------------------------------------------------------------------------
def spatial_reb_forward(x_ncdhw, p):
    N, cin, D, H, W = x_ncdhw.shape
    assert D % 2 == 0 and H % 2 == 0  # TODO(synk): odd D/H needs a different phase extent.
    B = N * W
    Do, Ho = D // 2, H // 2
    wrow = Ho + 2
    f1 = (Do + 2) * wrow
    fp = _round_up(f1, LANE)
    ncols = B * fp
    cout = p["wd"].shape[-1]

    # NCDHW -> (C, B, D, H): channels on sublanes, flattened spatial on lanes.
    x = jnp.transpose(x_ncdhw, (1, 0, 4, 2, 3)).reshape(cin, B, D, H)
    x_ph = _build_phases(x, Do, Ho, wrow, fp).astype(jnp.bfloat16)   # (4, cin, B*FP)
    mask = _interior_mask(B, Do, Ho, wrow, fp)                       # (1, B*FP) f32

    gw = _pick_group(B, fp) * fp
    grid = (ncols // gw,)
    cparams = pltpu.CompilerParams(dimension_semantics=("parallel",))

    # ---- downsample: conv (3,3,1) stride (2,2,1), bias only ----
    wd9 = _prep_w(p["wd"])
    bd = p["bd"].reshape(cout, 1).astype(jnp.float32)
    y = pl.pallas_call(
        _make_down_kernel(cin, wrow),
        out_shape=jax.ShapeDtypeStruct((cout, ncols), jnp.bfloat16),
        grid=grid,
        in_specs=[
            pl.BlockSpec((4, cin, gw), lambda g: (0, 0, g)),
            pl.BlockSpec((9, cout, cin), lambda g: (0, 0, 0)),
            pl.BlockSpec((cout, 1), lambda g: (0, 0)),
            pl.BlockSpec((1, gw), lambda g: (0, g)),
        ],
        out_specs=pl.BlockSpec((cout, gw), lambda g: (0, g)),
        compiler_params=cparams,
        cost_estimate=pl.CostEstimate(
            flops=2 * 9 * cin * cout * ncols, transcendentals=0,
            bytes_accessed=2 * (x_ph.size + wd9.size + cout * ncols) + 4 * mask.size),
    )(x_ph, wd9, bd, mask)

    # ---- encoder: each SpatialIRB fused into one pallas_call ----
    irb_kernel = _make_irb_kernel(wrow)
    for blk in p["irbs"]:
        s1 = blk["g1"] * lax.rsqrt(blk["v1"] + EPS)
        s2 = blk["g2"] * lax.rsqrt(blk["v2"] + EPS)
        w1 = _prep_w(blk["w1"], s1)                  # BN scale folded into weights
        w2 = _prep_w(blk["w2"], s2)
        t1 = ((blk["b1"] - blk["m1"]) * s1 + blk["beta1"]).reshape(cout, 1).astype(jnp.float32)
        t2 = ((blk["b2"] - blk["m2"]) * s2 + blk["beta2"]).reshape(cout, 1).astype(jnp.float32)
        y = pl.pallas_call(
            irb_kernel,
            out_shape=jax.ShapeDtypeStruct((cout, ncols), jnp.bfloat16),
            grid=grid,
            in_specs=[
                pl.BlockSpec((cout, gw), lambda g: (0, g)),
                pl.BlockSpec((9, cout, cout), lambda g: (0, 0, 0)),
                pl.BlockSpec((cout, 1), lambda g: (0, 0)),
                pl.BlockSpec((9, cout, cout), lambda g: (0, 0, 0)),
                pl.BlockSpec((cout, 1), lambda g: (0, 0)),
                pl.BlockSpec((1, gw), lambda g: (0, g)),
            ],
            out_specs=pl.BlockSpec((cout, gw), lambda g: (0, g)),
            compiler_params=cparams,
            cost_estimate=pl.CostEstimate(
                flops=2 * 2 * 9 * cout * cout * ncols, transcendentals=0,
                bytes_accessed=2 * (2 * cout * ncols + w1.size + w2.size) + 4 * mask.size),
        )(y, w1, t1, w2, t2, mask)

    # ---- crop the frame layout back to NCDHW ----
    yf = y.reshape(cout, B, fp)[:, :, :f1].reshape(cout, B, Do + 2, wrow)
    yf = yf[:, :, 1:Do + 1, 1:Ho + 1]                       # (cout, B, Do, Ho)
    yf = yf.reshape(cout, N, W, Do, Ho)
    return jnp.transpose(yf, (1, 0, 3, 4, 2)).astype(jnp.float32)


# ---------------------------------------------------------------------------
# Pure-JAX reference (lax.conv, f32) for correctness checking
# ---------------------------------------------------------------------------
def _ref_conv(x, w_hwio, b, stride):
    out = lax.conv_general_dilated(
        x, w_hwio, window_strides=(stride, stride), padding=((1, 1), (1, 1)),
        dimension_numbers=("NHWC", "HWIO", "NHWC"))
    return out + b


def reference_forward(x_ncdhw, p):
    N, C, D, H, W = x_ncdhw.shape
    x = jnp.transpose(x_ncdhw, (0, 4, 2, 3, 1)).reshape(N * W, D, H, C)
    y = _ref_conv(x, p["wd"], p["bd"], 2)
    for blk in p["irbs"]:
        t = _ref_conv(y, blk["w1"], blk["b1"], 1)
        t = (t - blk["m1"]) / jnp.sqrt(blk["v1"] + EPS) * blk["g1"] + blk["beta1"]
        t = jnp.maximum(t, 0.0)
        t = _ref_conv(t, blk["w2"], blk["b2"], 1)
        t = (t - blk["m2"]) / jnp.sqrt(blk["v2"] + EPS) * blk["g2"] + blk["beta2"]
        y = jnp.maximum(t + y, 0.0)
    B, Do, Ho, Co = y.shape
    return jnp.transpose(y.reshape(N, W, Do, Ho, Co), (0, 4, 2, 3, 1))


# ---------------------------------------------------------------------------
# Deterministic parameter construction (shapes from the module __init__)
# ---------------------------------------------------------------------------
def init_params(key, in_c, out_c, step=2):
    keys = iter(jax.random.split(key, 2 + 12 * step))

    def conv_w(k, cin, cout):
        return 0.1 * jax.random.normal(k, (3, 3, cin, cout), jnp.float32)

    def vec(k, c, scale=0.1):
        return scale * jax.random.normal(k, (c,), jnp.float32)

    p = {"wd": conv_w(next(keys), in_c, out_c), "bd": vec(next(keys), out_c), "irbs": []}
    for _ in range(step):
        blk = {
            "w1": conv_w(next(keys), out_c, out_c), "b1": vec(next(keys), out_c),
            "g1": 1.0 + vec(next(keys), out_c), "beta1": vec(next(keys), out_c),
            "m1": vec(next(keys), out_c),
            "v1": 1.0 + 0.1 * jnp.abs(jax.random.normal(next(keys), (out_c,), jnp.float32)),
            "w2": conv_w(next(keys), out_c, out_c), "b2": vec(next(keys), out_c),
            "g2": 1.0 + vec(next(keys), out_c), "beta2": vec(next(keys), out_c),
            "m2": vec(next(keys), out_c),
            "v2": 1.0 + 0.1 * jnp.abs(jax.random.normal(next(keys), (out_c,), jnp.float32)),
        }
        p["irbs"].append(blk)
    return p


if __name__ == "__main__":
    key = jax.random.PRNGKey(0)
    kx, kp = jax.random.split(key)

    N, in_c, D, H, W = 2, 4, 16, 16, 4      # NCDHW input to Conv3d
    out_c, step = 8, 2

    x = jax.random.normal(kx, (N, in_c, D, H, W), jnp.float32)
    params = init_params(kp, in_c, out_c, step)

    out = jax.jit(spatial_reb_forward)(x, params)
    out = jax.block_until_ready(out)

    assert out.shape == (N, out_c, D // 2, H // 2, W)
    ref = reference_forward(x, params)
    # bf16 activations/weights vs f32 reference -> loose tolerance.
    np.testing.assert_allclose(np.asarray(out), np.asarray(ref), atol=5e-2, rtol=5e-2)
    print("KERNEL_OK")
</pallas_src>

<mosaic_0001>
module attributes {stable_mosaic.version = 11 : i64} {
  func.func @kernel(%arg0: i32, %arg1: memref<4x4x512xbf16, #tpu.memory_space<vmem>>, %arg2: memref<9x8x4xbf16, #tpu.memory_space<vmem>>, %arg3: memref<8x1xf32, #tpu.memory_space<vmem>>, %arg4: memref<1x512xf32, #tpu.memory_space<vmem>>, %arg5: memref<8x512xbf16, #tpu.memory_space<vmem>>) attributes {dimension_semantics = [#tpu.dimension_semantics<parallel>], iteration_bounds = array<i64: 2>, scalar_prefetch = 0 : i64, scratch_operands = 0 : i64, tpu.core_type = #tpu.core_type<tc>, window_params = [{transform_indices = @transform_0, window_bounds = array<i64: 4, 4, 512>}, {pipeline_mode = #tpu.pipeline_mode<synchronous>, transform_indices = @transform_1, window_bounds = array<i64: 9, 8, 4>}, {pipeline_mode = #tpu.pipeline_mode<synchronous>, transform_indices = @transform_2, window_bounds = array<i64: 8, 1>}, {transform_indices = @transform_3, window_bounds = array<i64: 1, 512>}, {transform_indices = @transform_4, window_bounds = array<i64: 8, 512>}]} {
    %c0 = arith.constant 0 : index
    %c0_0 = arith.constant 0 : index
    %c0_1 = arith.constant 0 : index
    %0 = vector.load %arg1[%c0, %c0_0, %c0_1] : memref<4x4x512xbf16, #tpu.memory_space<vmem>>, vector<1x4x512xbf16>
    %1 = vector.shape_cast %0 : vector<1x4x512xbf16> to vector<4x512xbf16>
    %c1 = arith.constant 1 : index
    %c0_2 = arith.constant 0 : index
    %c0_3 = arith.constant 0 : index
    %2 = vector.load %arg1[%c1, %c0_2, %c0_3] : memref<4x4x512xbf16, #tpu.memory_space<vmem>>, vector<1x4x512xbf16>
    %3 = vector.shape_cast %2 : vector<1x4x512xbf16> to vector<4x512xbf16>
    %c2 = arith.constant 2 : index
    %c0_4 = arith.constant 0 : index
    %c0_5 = arith.constant 0 : index
    %4 = vector.load %arg1[%c2, %c0_4, %c0_5] : memref<4x4x512xbf16, #tpu.memory_space<vmem>>, vector<1x4x512xbf16>
    %5 = vector.shape_cast %4 : vector<1x4x512xbf16> to vector<4x512xbf16>
    %c3 = arith.constant 3 : index
    %c0_6 = arith.constant 0 : index
    %c0_7 = arith.constant 0 : index
    %6 = vector.load %arg1[%c3, %c0_6, %c0_7] : memref<4x4x512xbf16, #tpu.memory_space<vmem>>, vector<1x4x512xbf16>
    %7 = vector.shape_cast %6 : vector<1x4x512xbf16> to vector<4x512xbf16>
    %c0_8 = arith.constant 0 : index
    %c0_9 = arith.constant 0 : index
    %c0_10 = arith.constant 0 : index
    %8 = vector.load %arg2[%c0_8, %c0_9, %c0_10] : memref<9x8x4xbf16, #tpu.memory_space<vmem>>, vector<1x8x4xbf16>
    %9 = vector.shape_cast %8 : vector<1x8x4xbf16> to vector<8x4xbf16>
    %cst = arith.constant dense<0.000000e+00> : vector<8x512xf32>
    %10 = tpu.matmul %9, %1, %cst {dimension_numbers = #tpu.dot_dimension_numbers<[1], [0], [0], [1], [0, 0, 1, 1], [], []>} : vector<8x4xbf16>, vector<4x512xbf16>, vector<8x512xf32> -> vector<8x512xf32>
    %c1_11 = arith.constant 1 : index
    %c0_12 = arith.constant 0 : index
    %c0_13 = arith.constant 0 : index
    %11 = vector.load %arg2[%c1_11, %c0_12, %c0_13] : memref<9x8x4xbf16, #tpu.memory_space<vmem>>, vector<1x8x4xbf16>
    %12 = vector.shape_cast %11 : vector<1x8x4xbf16> to vector<8x4xbf16>
    %cst_14 = arith.constant dense<0.000000e+00> : vector<8x512xf32>
    %13 = tpu.matmul %12, %3, %cst_14 {dimension_numbers = #tpu.dot_dimension_numbers<[1], [0], [0], [1], [0, 0, 1, 1], [], []>} : vector<8x4xbf16>, vector<4x512xbf16>, vector<8x512xf32> -> vector<8x512xf32>
    %14 = arith.addf %10, %13 : vector<8x512xf32>
    %15 = vector.extract_strided_slice %1 {offsets = [0, 1], sizes = [4, 511], strides = [1, 1]} : vector<4x512xbf16> to vector<4x511xbf16>
    %cst_15 = arith.constant 0.000000e+00 : bf16
    %16 = vector.broadcast %cst_15 : bf16 to vector<4x1xbf16>
    %17 = tpu.concatenate %15, %16 in 1 : vector<4x511xbf16>, vector<4x1xbf16> -> vector<4x512xbf16>
    %c2_16 = arith.constant 2 : index
    %c0_17 = arith.constant 0 : index
    %c0_18 = arith.constant 0 : index
    %18 = vector.load %arg2[%c2_16, %c0_17, %c0_18] : memref<9x8x4xbf16, #tpu.memory_space<vmem>>, vector<1x8x4xbf16>
    %19 = vector.shape_cast %18 : vector<1x8x4xbf16> to vector<8x4xbf16>
    %cst_19 = arith.constant dense<0.000000e+00> : vector<8x512xf32>
    %20 = tpu.matmul %19, %17, %cst_19 {dimension_numbers = #tpu.dot_dimension_numbers<[1], [0], [0], [1], [0, 0, 1, 1], [], []>} : vector<8x4xbf16>, vector<4x512xbf16>, vector<8x512xf32> -> vector<8x512xf32>
    %21 = arith.addf %14, %20 : vector<8x512xf32>
    %c3_20 = arith.constant 3 : index
    %c0_21 = arith.constant 0 : index
    %c0_22 = arith.constant 0 : index
    %22 = vector.load %arg2[%c3_20, %c0_21, %c0_22] : memref<9x8x4xbf16, #tpu.memory_space<vmem>>, vector<1x8x4xbf16>
    %23 = vector.shape_cast %22 : vector<1x8x4xbf16> to vector<8x4xbf16>
    %cst_23 = arith.constant dense<0.000000e+00> : vector<8x512xf32>
    %24 = tpu.matmul %23, %5, %cst_23 {dimension_numbers = #tpu.dot_dimension_numbers<[1], [0], [0], [1], [0, 0, 1, 1], [], []>} : vector<8x4xbf16>, vector<4x512xbf16>, vector<8x512xf32> -> vector<8x512xf32>
    %25 = arith.addf %21, %24 : vector<8x512xf32>
    %c4 = arith.constant 4 : index
    %c0_24 = arith.constant 0 : index
    %c0_25 = arith.constant 0 : index
    %26 = vector.load %arg2[%c4, %c0_24, %c0_25] : memref<9x8x4xbf16, #tpu.memory_space<vmem>>, vector<1x8x4xbf16>
    %27 = vector.shape_cast %26 : vector<1x8x4xbf16> to vector<8x4xbf16>
    %cst_26 = arith.constant dense<0.000000e+00> : vector<8x512xf32>
    %28 = tpu.matmul %27, %7, %cst_26 {dimension_numbers = #tpu.dot_dimension_numbers<[1], [0], [0], [1], [0, 0, 1, 1], [], []>} : vector<8x4xbf16>, vector<4x512xbf16>, vector<8x512xf32> -> vector<8x512xf32>
    %29 = arith.addf %25, %28 : vector<8x512xf32>
    %30 = vector.extract_strided_slice %5 {offsets = [0, 1], sizes = [4, 511], strides = [1, 1]} : vector<4x512xbf16> to vector<4x511xbf16>
    %cst_27 = arith.constant 0.000000e+00 : bf16
    %31 = vector.broadcast %cst_27 : bf16 to vector<4x1xbf16>
    %32 = tpu.concatenate %30, %31 in 1 : vector<4x511xbf16>, vector<4x1xbf16> -> vector<4x512xbf16>
    %c5 = arith.constant 5 : index
    %c0_28 = arith.constant 0 : index
    %c0_29 = arith.constant 0 : index
    %33 = vector.load %arg2[%c5, %c0_28, %c0_29] : memref<9x8x4xbf16, #tpu.memory_space<vmem>>, vector<1x8x4xbf16>
    %34 = vector.shape_cast %33 : vector<1x8x4xbf16> to vector<8x4xbf16>
    %cst_30 = arith.constant dense<0.000000e+00> : vector<8x512xf32>
    %35 = tpu.matmul %34, %32, %cst_30 {dimension_numbers = #tpu.dot_dimension_numbers<[1], [0], [0], [1], [0, 0, 1, 1], [], []>} : vector<8x4xbf16>, vector<4x512xbf16>, vector<8x512xf32> -> vector<8x512xf32>
    %36 = arith.addf %29, %35 : vector<8x512xf32>
    %37 = vector.extract_strided_slice %1 {offsets = [0, 10], sizes = [4, 502], strides = [1, 1]} : vector<4x512xbf16> to vector<4x502xbf16>
    %cst_31 = arith.constant 0.000000e+00 : bf16
    %38 = vector.broadcast %cst_31 : bf16 to vector<4x10xbf16>
    %39 = tpu.concatenate %37, %38 in 1 : vector<4x502xbf16>, vector<4x10xbf16> -> vector<4x512xbf16>
    %c6 = arith.constant 6 : index
    %c0_32 = arith.constant 0 : index
    %c0_33 = arith.constant 0 : index
    %40 = vector.load %arg2[%c6, %c0_32, %c0_33] : memref<9x8x4xbf16, #tpu.memory_space<vmem>>, vector<1x8x4xbf16>
    %41 = vector.shape_cast %40 : vector<1x8x4xbf16> to vector<8x4xbf16>
    %cst_34 = arith.constant dense<0.000000e+00> : vector<8x512xf32>
    %42 = tpu.matmul %41, %39, %cst_34 {dimension_numbers = #tpu.dot_dimension_numbers<[1], [0], [0], [1], [0, 0, 1, 1], [], []>} : vector<8x4xbf16>, vector<4x512xbf16>, vector<8x512xf32> -> vector<8x512xf32>
    %43 = arith.addf %36, %42 : vector<8x512xf32>
    %44 = vector.extract_strided_slice %3 {offsets = [0, 10], sizes = [4, 502], strides = [1, 1]} : vector<4x512xbf16> to vector<4x502xbf16>
    %cst_35 = arith.constant 0.000000e+00 : bf16
    %45 = vector.broadcast %cst_35 : bf16 to vector<4x10xbf16>
    %46 = tpu.concatenate %44, %45 in 1 : vector<4x502xbf16>, vector<4x10xbf16> -> vector<4x512xbf16>
    %c7 = arith.constant 7 : index
    %c0_36 = arith.constant 0 : index
    %c0_37 = arith.constant 0 : index
    %47 = vector.load %arg2[%c7, %c0_36, %c0_37] : memref<9x8x4xbf16, #tpu.memory_space<vmem>>, vector<1x8x4xbf16>
    %48 = vector.shape_cast %47 : vector<1x8x4xbf16> to vector<8x4xbf16>
    %cst_38 = arith.constant dense<0.000000e+00> : vector<8x512xf32>
    %49 = tpu.matmul %48, %46, %cst_38 {dimension_numbers = #tpu.dot_dimension_numbers<[1], [0], [0], [1], [0, 0, 1, 1], [], []>} : vector<8x4xbf16>, vector<4x512xbf16>, vector<8x512xf32> -> vector<8x512xf32>
    %50 = arith.addf %43, %49 : vector<8x512xf32>
    %51 = vector.extract_strided_slice %1 {offsets = [0, 11], sizes = [4, 501], strides = [1, 1]} : vector<4x512xbf16> to vector<4x501xbf16>
    %cst_39 = arith.constant 0.000000e+00 : bf16
    %52 = vector.broadcast %cst_39 : bf16 to vector<4x11xbf16>
    %53 = tpu.concatenate %51, %52 in 1 : vector<4x501xbf16>, vector<4x11xbf16> -> vector<4x512xbf16>
    %c8 = arith.constant 8 : index
    %c0_40 = arith.constant 0 : index
    %c0_41 = arith.constant 0 : index
    %54 = vector.load %arg2[%c8, %c0_40, %c0_41] : memref<9x8x4xbf16, #tpu.memory_space<vmem>>, vector<1x8x4xbf16>
    %55 = vector.shape_cast %54 : vector<1x8x4xbf16> to vector<8x4xbf16>
    %cst_42 = arith.constant dense<0.000000e+00> : vector<8x512xf32>
    %56 = tpu.matmul %55, %53, %cst_42 {dimension_numbers = #tpu.dot_dimension_numbers<[1], [0], [0], [1], [0, 0, 1, 1], [], []>} : vector<8x4xbf16>, vector<4x512xbf16>, vector<8x512xf32> -> vector<8x512xf32>
    %57 = arith.addf %50, %56 : vector<8x512xf32>
    %c0_43 = arith.constant 0 : index
    %c0_44 = arith.constant 0 : index
    %58 = vector.load %arg3[%c0_43, %c0_44] : memref<8x1xf32, #tpu.memory_space<vmem>>, vector<8x1xf32>
    %59 = vector.broadcast %58 : vector<8x1xf32> to vector<8x512xf32>
    %60 = arith.addf %57, %59 : vector<8x512xf32>
    %c0_45 = arith.constant 0 : index
    %c0_46 = arith.constant 0 : index
    %61 = vector.load %arg4[%c0_45, %c0_46] : memref<1x512xf32, #tpu.memory_space<vmem>>, vector<1x512xf32>
    %62 = vector.broadcast %61 : vector<1x512xf32> to vector<8x512xf32>
    %63 = arith.mulf %60, %62 : vector<8x512xf32>
    %64 = arith.truncf %63 : vector<8x512xf32> to vector<8x512xbf16>
    %c0_47 = arith.constant 0 : index
    %c0_48 = arith.constant 0 : index
    %65 = vector.load %arg5[%c0_47, %c0_48] : memref<8x512xbf16, #tpu.memory_space<vmem>>, vector<8x512xbf16>
    tpu.vector_store %arg5[%c0_47, %c0_48], %64 {strides = array<i32>} : memref<8x512xbf16, #tpu.memory_space<vmem>>, vector<8x512xbf16>,
    return
  }
  func.func @transform_0(%arg0: i32) -> (i32, i32, i32) {
    %c0_i32 = arith.constant 0 : i32
    %c0_i32_0 = arith.constant 0 : i32
    %c0_i32_1 = arith.constant 0 : i32
    return %c0_i32, %c0_i32_0, %arg0 : i32, i32, i32
  }
  func.func @transform_1(%arg0: i32) -> (i32, i32, i32) {
    %c0_i32 = arith.constant 0 : i32
    %c0_i32_0 = arith.constant 0 : i32
    %c0_i32_1 = arith.constant 0 : i32
    %c0_i32_2 = arith.constant 0 : i32
    return %c0_i32, %c0_i32_0, %c0_i32_1 : i32, i32, i32
  }
  func.func @transform_2(%arg0: i32) -> (i32, i32) {
    %c0_i32 = arith.constant 0 : i32
    %c0_i32_0 = arith.constant 0 : i32
    %c0_i32_1 = arith.constant 0 : i32
    return %c0_i32, %c0_i32_0 : i32, i32
  }
  func.func @transform_3(%arg0: i32) -> (i32, i32) {
    %c0_i32 = arith.constant 0 : i32
    %c0_i32_0 = arith.constant 0 : i32
    return %c0_i32, %arg0 : i32, i32
  }
  func.func @transform_4(%arg0: i32) -> (i32, i32) {
    %c0_i32 = arith.constant 0 : i32
    %c0_i32_0 = arith.constant 0 : i32
    return %c0_i32, %arg0 : i32, i32
  }
}

module attributes {stable_mosaic.version = 11 : i64} {
  func.func @kernel(%arg0: i32, %arg1: memref<8x512xbf16, #tpu.memory_space<vmem>>, %arg2: memref<9x8x8xbf16, #tpu.memory_space<vmem>>, %arg3: memref<8x1xf32, #tpu.memory_space<vmem>>, %arg4: memref<9x8x8xbf16, #tpu.memory_space<vmem>>, %arg5: memref<8x1xf32, #tpu.memory_space<vmem>>, %arg6: memref<1x512xf32, #tpu.memory_space<vmem>>, %arg7: memref<8x512xbf16, #tpu.memory_space<vmem>>) attributes {dimension_semantics = [#tpu.dimension_semantics<parallel>], iteration_bounds = array<i64: 2>, scalar_prefetch = 0 : i64, scratch_operands = 0 : i64, tpu.core_type = #tpu.core_type<tc>, window_params = [{transform_indices = @transform_0, window_bounds = array<i64: 8, 512>}, {pipeline_mode = #tpu.pipeline_mode<synchronous>, transform_indices = @transform_1, window_bounds = array<i64: 9, 8, 8>}, {pipeline_mode = #tpu.pipeline_mode<synchronous>, transform_indices = @transform_2, window_bounds = array<i64: 8, 1>}, {pipeline_mode = #tpu.pipeline_mode<synchronous>, transform_indices = @transform_3, window_bounds = array<i64: 9, 8, 8>}, {pipeline_mode = #tpu.pipeline_mode<synchronous>, transform_indices = @transform_4, window_bounds = array<i64: 8, 1>}, {transform_indices = @transform_5, window_bounds = array<i64: 1, 512>}, {transform_indices = @transform_6, window_bounds = array<i64: 8, 512>}]} {
    %c0 = arith.constant 0 : index
    %c0_0 = arith.constant 0 : index
    %0 = vector.load %arg1[%c0, %c0_0] : memref<8x512xbf16, #tpu.memory_space<vmem>>, vector<8x512xbf16>
    %c0_1 = arith.constant 0 : index
    %c0_2 = arith.constant 0 : index
    %1 = vector.load %arg6[%c0_1, %c0_2] : memref<1x512xf32, #tpu.memory_space<vmem>>, vector<1x512xf32>
    %cst = arith.constant 0.000000e+00 : bf16
    %2 = vector.broadcast %cst : bf16 to vector<8x11xbf16>
    %3 = vector.extract_strided_slice %0 {offsets = [0, 0], sizes = [8, 501], strides = [1, 1]} : vector<8x512xbf16> to vector<8x501xbf16>
    %4 = tpu.concatenate %2, %3 in 1 : vector<8x11xbf16>, vector<8x501xbf16> -> vector<8x512xbf16>
    %c0_3 = arith.constant 0 : index
    %c0_4 = arith.constant 0 : index
    %c0_5 = arith.constant 0 : index
    %5 = vector.load %arg2[%c0_3, %c0_4, %c0_5] : memref<9x8x8xbf16, #tpu.memory_space<vmem>>, vector<1x8x8xbf16>
    %6 = vector.shape_cast %5 : vector<1x8x8xbf16> to vector<8x8xbf16>
    %cst_6 = arith.constant dense<0.000000e+00> : vector<8x512xf32>
    %7 = tpu.matmul %6, %4, %cst_6 {dimension_numbers = #tpu.dot_dimension_numbers<[1], [0], [0], [1], [0, 0, 1, 1], [], []>} : vector<8x8xbf16>, vector<8x512xbf16>, vector<8x512xf32> -> vector<8x512xf32>
    %cst_7 = arith.constant 0.000000e+00 : bf16
    %8 = vector.broadcast %cst_7 : bf16 to vector<8x10xbf16>
    %9 = vector.extract_strided_slice %0 {offsets = [0, 0], sizes = [8, 502], strides = [1, 1]} : vector<8x512xbf16> to vector<8x502xbf16>
    %10 = tpu.concatenate %8, %9 in 1 : vector<8x10xbf16>, vector<8x502xbf16> -> vector<8x512xbf16>
    %c1 = arith.constant 1 : index
    %c0_8 = arith.constant 0 : index
    %c0_9 = arith.constant 0 : index
    %11 = vector.load %arg2[%c1, %c0_8, %c0_9] : memref<9x8x8xbf16, #tpu.memory_space<vmem>>, vector<1x8x8xbf16>
    %12 = vector.shape_cast %11 : vector<1x8x8xbf16> to vector<8x8xbf16>
    %cst_10 = arith.constant dense<0.000000e+00> : vector<8x512xf32>
    %13 = tpu.matmul %12, %10, %cst_10 {dimension_numbers = #tpu.dot_dimension_numbers<[1], [0], [0], [1], [0, 0, 1, 1], [], []>} : vector<8x8xbf16>, vector<8x512xbf16>, vector<8x512xf32> -> vector<8x512xf32>
    %14 = arith.addf %7, %13 : vector<8x512xf32>
    %cst_11 = arith.constant 0.000000e+00 : bf16
    %15 = vector.broadcast %cst_11 : bf16 to vector<8x9xbf16>
    %16 = vector.extract_strided_slice %0 {offsets = [0, 0], sizes = [8, 503], strides = [1, 1]} : vector<8x512xbf16> to vector<8x503xbf16>
    %17 = tpu.concatenate %15, %16 in 1 : vector<8x9xbf16>, vector<8x503xbf16> -> vector<8x512xbf16>
    %c2 = arith.constant 2 : index
    %c0_12 = arith.constant 0 : index
    %c0_13 = arith.constant 0 : index
    %18 = vector.load %arg2[%c2, %c0_12, %c0_13] : memref<9x8x8xbf16, #tpu.memory_space<vmem>>, vector<1x8x8xbf16>
    %19 = vector.shape_cast %18 : vector<1x8x8xbf16> to vector<8x8xbf16>
    %cst_14 = arith.constant dense<0.000000e+00> : vector<8x512xf32>
    %20 = tpu.matmul %19, %17, %cst_14 {dimension_numbers = #tpu.dot_dimension_numbers<[1], [0], [0], [1], [0, 0, 1, 1], [], []>} : vector<8x8xbf16>, vector<8x512xbf16>, vector<8x512xf32> -> vector<8x512xf32>
    %21 = arith.addf %14, %20 : vector<8x512xf32>
    %cst_15 = arith.constant 0.000000e+00 : bf16
    %22 = vector.broadcast %cst_15 : bf16 to vector<8x1xbf16>
    %23 = vector.extract_strided_slice %0 {offsets = [0, 0], sizes = [8, 511], strides = [1, 1]} : vector<8x512xbf16> to vector<8x511xbf16>
    %24 = tpu.concatenate %22, %23 in 1 : vector<8x1xbf16>, vector<8x511xbf16> -> vector<8x512xbf16>
    %c3 = arith.constant 3 : index
    %c0_16 = arith.constant 0 : index
    %c0_17 = arith.constant 0 : index
    %25 = vector.load %arg2[%c3, %c0_16, %c0_17] : memref<9x8x8xbf16, #tpu.memory_space<vmem>>, vector<1x8x8xbf16>
    %26 = vector.shape_cast %25 : vector<1x8x8xbf16> to vector<8x8xbf16>
    %cst_18 = arith.constant dense<0.000000e+00> : vector<8x512xf32>
    %27 = tpu.matmul %26, %24, %cst_18 {dimension_numbers = #tpu.dot_dimension_numbers<[1], [0], [0], [1], [0, 0, 1, 1], [], []>} : vector<8x8xbf16>, vector<8x512xbf16>, vector<8x512xf32> -> vector<8x512xf32>
    %28 = arith.addf %21, %27 : vector<8x512xf32>
    %c4 = arith.constant 4 : index
    %c0_19 = arith.constant 0 : index
    %c0_20 = arith.constant 0 : index
    %29 = vector.load %arg2[%c4, %c0_19, %c0_20] : memref<9x8x8xbf16, #tpu.memory_space<vmem>>, vector<1x8x8xbf16>
    %30 = vector.shape_cast %29 : vector<1x8x8xbf16> to vector<8x8xbf16>
    %cst_21 = arith.constant dense<0.000000e+00> : vector<8x512xf32>
    %31 = tpu.matmul %30, %0, %cst_21 {dimension_numbers = #tpu.dot_dimension_numbers<[1], [0], [0], [1], [0, 0, 1, 1], [], []>} : vector<8x8xbf16>, vector<8x512xbf16>, vector<8x512xf32> -> vector<8x512xf32>
    %32 = arith.addf %28, %31 : vector<8x512xf32>
    %33 = vector.extract_strided_slice %0 {offsets = [0, 1], sizes = [8, 511], strides = [1, 1]} : vector<8x512xbf16> to vector<8x511xbf16>
    %cst_22 = arith.constant 0.000000e+00 : bf16
    %34 = vector.broadcast %cst_22 : bf16 to vector<8x1xbf16>
    %35 = tpu.concatenate %33, %34 in 1 : vector<8x511xbf16>, vector<8x1xbf16> -> vector<8x512xbf16>
    %c5 = arith.constant 5 : index
    %c0_23 = arith.constant 0 : index
    %c0_24 = arith.constant 0 : index
    %36 = vector.load %arg2[%c5, %c0_23, %c0_24] : memref<9x8x8xbf16, #tpu.memory_space<vmem>>, vector<1x8x8xbf16>
    %37 = vector.shape_cast %36 : vector<1x8x8xbf16> to vector<8x8xbf16>
    %cst_25 = arith.constant dense<0.000000e+00> : vector<8x512xf32>
    %38 = tpu.matmul %37, %35, %cst_25 {dimension_numbers = #tpu.dot_dimension_numbers<[1], [0], [0], [1], [0, 0, 1, 1], [], []>} : vector<8x8xbf16>, vector<8x512xbf16>, vector<8x512xf32> -> vector<8x512xf32>
    %39 = arith.addf %32, %38 : vector<8x512xf32>
    %40 = vector.extract_strided_slice %0 {offsets = [0, 9], sizes = [8, 503], strides = [1, 1]} : vector<8x512xbf16> to vector<8x503xbf16>
    %cst_26 = arith.constant 0.000000e+00 : bf16
    %41 = vector.broadcast %cst_26 : bf16 to vector<8x9xbf16>
    %42 = tpu.concatenate %40, %41 in 1 : vector<8x503xbf16>, vector<8x9xbf16> -> vector<8x512xbf16>
    %c6 = arith.constant 6 : index
    %c0_27 = arith.constant 0 : index
    %c0_28 = arith.constant 0 : index
    %43 = vector.load %arg2[%c6, %c0_27, %c0_28] : memref<9x8x8xbf16, #tpu.memory_space<vmem>>, vector<1x8x8xbf16>
    %44 = vector.shape_cast %43 : vector<1x8x8xbf16> to vector<8x8xbf16>
    %cst_29 = arith.constant dense<0.000000e+00> : vector<8x512xf32>
    %45 = tpu.matmul %44, %42, %cst_29 {dimension_numbers = #tpu.dot_dimension_numbers<[1], [0], [0], [1], [0, 0, 1, 1], [], []>} : vector<8x8xbf16>, vector<8x512xbf16>, vector<8x512xf32> -> vector<8x512xf32>
    %46 = arith.addf %39, %45 : vector<8x512xf32>
    %47 = vector.extract_strided_slice %0 {offsets = [0, 10], sizes = [8, 502], strides = [1, 1]} : vector<8x512xbf16> to vector<8x502xbf16>
    %cst_30 = arith.constant 0.000000e+00 : bf16
    %48 = vector.broadcast %cst_30 : bf16 to vector<8x10xbf16>
    %49 = tpu.concatenate %47, %48 in 1 : vector<8x502xbf16>, vector<8x10xbf16> -> vector<8x512xbf16>
    %c7 = arith.constant 7 : index
    %c0_31 = arith.constant 0 : index
    %c0_32 = arith.constant 0 : index
    %50 = vector.load %arg2[%c7, %c0_31, %c0_32] : memref<9x8x8xbf16, #tpu.memory_space<vmem>>, vector<1x8x8xbf16>
    %51 = vector.shape_cast %50 : vector<1x8x8xbf16> to vector<8x8xbf16>
    %cst_33 = arith.constant dense<0.000000e+00> : vector<8x512xf32>
    %52 = tpu.matmul %51, %49, %cst_33 {dimension_numbers = #tpu.dot_dimension_numbers<[1], [0], [0], [1], [0, 0, 1, 1], [], []>} : vector<8x8xbf16>, vector<8x512xbf16>, vector<8x512xf32> -> vector<8x512xf32>
    %53 = arith.addf %46, %52 : vector<8x512xf32>
    %54 = vector.extract_strided_slice %0 {offsets = [0, 11], sizes = [8, 501], strides = [1, 1]} : vector<8x512xbf16> to vector<8x501xbf16>
    %cst_34 = arith.constant 0.000000e+00 : bf16
    %55 = vector.broadcast %cst_34 : bf16 to vector<8x11xbf16>
    %56 = tpu.concatenate %54, %55 in 1 : vector<8x501xbf16>, vector<8x11xbf16> -> vector<8x512xbf16>
    %c8 = arith.constant 8 : index
    %c0_35 = arith.constant 0 : index
    %c0_36 = arith.constant 0 : index
    %57 = vector.load %arg2[%c8, %c0_35, %c0_36] : memref<9x8x8xbf16, #tpu.memory_space<vmem>>, vector<1x8x8xbf16>
    %58 = vector.shape_cast %57 : vector<1x8x8xbf16> to vector<8x8xbf16>
    %cst_37 = arith.constant dense<0.000000e+00> : vector<8x512xf32>
    %59 = tpu.matmul %58, %56, %cst_37 {dimension_numbers = #tpu.dot_dimension_numbers<[1], [0], [0], [1], [0, 0, 1, 1], [], []>} : vector<8x8xbf16>, vector<8x512xbf16>, vector<8x512xf32> -> vector<8x512xf32>
    %60 = arith.addf %53, %59 : vector<8x512xf32>
    %c0_38 = arith.constant 0 : index
    %c0_39 = arith.constant 0 : index
    %61 = vector.load %arg3[%c0_38, %c0_39] : memref<8x1xf32, #tpu.memory_space<vmem>>, vector<8x1xf32>
    %62 = vector.broadcast %61 : vector<8x1xf32> to vector<8x512xf32>
    %63 = arith.addf %60, %62 : vector<8x512xf32>
    %cst_40 = arith.constant 0.000000e+00 : f32
    %64 = vector.broadcast %cst_40 : f32 to vector<8x512xf32>
    %65 = arith.maximumf %63, %64 : vector<8x512xf32>
    %66 = vector.broadcast %1 : vector<1x512xf32> to vector<8x512xf32>
    %67 = arith.mulf %65, %66 : vector<8x512xf32>
    %68 = arith.truncf %67 : vector<8x512xf32> to vector<8x512xbf16>
    %cst_41 = arith.constant 0.000000e+00 : bf16
    %69 = vector.broadcast %cst_41 : bf16 to vector<8x11xbf16>
    %70 = vector.extract_strided_slice %68 {offsets = [0, 0], sizes = [8, 501], strides = [1, 1]} : vector<8x512xbf16> to vector<8x501xbf16>
    %71 = tpu.concatenate %69, %70 in 1 : vector<8x11xbf16>, vector<8x501xbf16> -> vector<8x512xbf16>
    %c0_42 = arith.constant 0 : index
    %c0_43 = arith.constant 0 : index
    %c0_44 = arith.constant 0 : index
    %72 = vector.load %arg4[%c0_42, %c0_43, %c0_44] : memref<9x8x8xbf16, #tpu.memory_space<vmem>>, vector<1x8x8xbf16>
    %73 = vector.shape_cast %72 : vector<1x8x8xbf16> to vector<8x8xbf16>
    %cst_45 = arith.constant dense<0.000000e+00> : vector<8x512xf32>
    %74 = tpu.matmul %73, %71, %cst_45 {dimension_numbers = #tpu.dot_dimension_numbers<[1], [0], [0], [1], [0, 0, 1, 1], [], []>} : vector<8x8xbf16>, vector<8x512xbf16>, vector<8x512xf32> -> vector<8x512xf32>
    %cst_46 = arith.constant 0.000000e+00 : bf16
    %75 = vector.broadcast %cst_46 : bf16 to vector<8x10xbf16>
    %76 = vector.extract_strided_slice %68 {offsets = [0, 0], sizes = [8, 502], strides = [1, 1]} : vector<8x512xbf16> to vector<8x502xbf16>
    %77 = tpu.concatenate %75, %76 in 1 : vector<8x10xbf16>, vector<8x502xbf16> -> vector<8x512xbf16>
    %c1_47 = arith.constant 1 : index
    %c0_48 = arith.constant 0 : index
    %c0_49 = arith.constant 0 : index
    %78 = vector.load %arg4[%c1_47, %c0_48, %c0_49] : memref<9x8x8xbf16, #tpu.memory_space<vmem>>, vector<1x8x8xbf16>
    %79 = vector.shape_cast %78 : vector<1x8x8xbf16> to vector<8x8xbf16>
    %cst_50 = arith.constant dense<0.000000e+00> : vector<8x512xf32>
    %80 = tpu.matmul %79, %77, %cst_50 {dimension_numbers = #tpu.dot_dimension_numbers<[1], [0], [0], [1], [0, 0, 1, 1], [], []>} : vector<8x8xbf16>, vector<8x512xbf16>, vector<8x512xf32> -> vector<8x512xf32>
    %81 = arith.addf %74, %80 : vector<8x512xf32>
    %cst_51 = arith.constant 0.000000e+00 : bf16
    %82 = vector.broadcast %cst_51 : bf16 to vector<8x9xbf16>
    %83 = vector.extract_strided_slice %68 {offsets = [0, 0], sizes = [8, 503], strides = [1, 1]} : vector<8x512xbf16> to vector<8x503xbf16>
    %84 = tpu.concatenate %82, %83 in 1 : vector<8x9xbf16>, vector<8x503xbf16> -> vector<8x512xbf16>
    %c2_52 = arith.constant 2 : index
    %c0_53 = arith.constant 0 : index
    %c0_54 = arith.constant 0 : index
    %85 = vector.load %arg4[%c2_52, %c0_53, %c0_54] : memref<9x8x8xbf16, #tpu.memory_space<vmem>>, vector<1x8x8xbf16>
    %86 = vector.shape_cast %85 : vector<1x8x8xbf16> to vector<8x8xbf16>
    %cst_55 = arith.constant dense<0.000000e+00> : vector<8x512xf32>
    %87 = tpu.matmul %86, %84, %cst_55 {dimension_numbers = #tpu.dot_dimension_numbers<[1], [0], [0], [1], [0, 0, 1, 1], [], []>} : vector<8x8xbf16>, vector<8x512xbf16>, vector<8x512xf32> -> vector<8x512xf32>
    %88 = arith.addf %81, %87 : vector<8x512xf32>
    %cst_56 = arith.constant 0.000000e+00 : bf16
    %89 = vector.broadcast %cst_56 : bf16 to vector<8x1xbf16>
    %90 = vector.extract_strided_slice %68 {offsets = [0, 0], sizes = [8, 511], strides = [1, 1]} : vector<8x512xbf16> to vector<8x511xbf16>
    %91 = tpu.concatenate %89, %90 in 1 : vector<8x1xbf16>, vector<8x511xbf16> -> vector<8x512xbf16>
    %c3_57 = arith.constant 3 : index
    %c0_58 = arith.constant 0 : index
    %c0_59 = arith.constant 0 : index
    %92 = vector.load %arg4[%c3_57, %c0_58, %c0_59] : memref<9x8x8xbf16, #tpu.memory_space<vmem>>, vector<1x8x8xbf16>
    %93 = vector.shape_cast %92 : vector<1x8x8xbf16> to vector<8x8xbf16>
    %cst_60 = arith.constant dense<0.000000e+00> : vector<8x512xf32>
    %94 = tpu.matmul %93, %91, %cst_60 {dimension_numbers = #tpu.dot_dimension_numbers<[1], [0], [0], [1], [0, 0, 1, 1], [], []>} : vector<8x8xbf16>, vector<8x512xbf16>, vector<8x512xf32> -> vector<8x512xf32>
    %95 = arith.addf %88, %94 : vector<8x512xf32>
    %c4_61 = arith.constant 4 : index
    %c0_62 = arith.constant 0 : index
    %c0_63 = arith.constant 0 : index
    %96 = vector.load %arg4[%c4_61, %c0_62, %c0_63] : memref<9x8x8xbf16, #tpu.memory_space<vmem>>, vector<1x8x8xbf16>
    %97 = vector.shape_cast %96 : vector<1x8x8xbf16> to vector<8x8xbf16>
    %cst_64 = arith.constant dense<0.000000e+00> : vector<8x512xf32>
    %98 = tpu.matmul %97, %68, %cst_64 {dimension_numbers = #tpu.dot_dimension_numbers<[1], [0], [0], [1], [0, 0, 1, 1], [], []>} : vector<8x8xbf16>, vector<8x512xbf16>, vector<8x512xf32> -> vector<8x512xf32>
    %99 = arith.addf %95, %98 : vector<8x512xf32>
    %100 = vector.extract_strided_slice %68 {offsets = [0, 1], sizes = [8, 511], strides = [1, 1]} : vector<8x512xbf16> to vector<8x511xbf16>
    %cst_65 = arith.constant 0.000000e+00 : bf16
    %101 = vector.broadcast %cst_65 : bf16 to vector<8x1xbf16>
    %102 = tpu.concatenate %100, %101 in 1 : vector<8x511xbf16>, vector<8x1xbf16> -> vector<8x512xbf16>
    %c5_66 = arith.constant 5 : index
    %c0_67 = arith.constant 0 : index
    %c0_68 = arith.constant 0 : index
    %103 = vector.load %arg4[%c5_66, %c0_67, %c0_68] : memref<9x8x8xbf16, #tpu.memory_space<vmem>>, vector<1x8x8xbf16>
    %104 = vector.shape_cast %103 : vector<1x8x8xbf16> to vector<8x8xbf16>
    %cst_69 = arith.constant dense<0.000000e+00> : vector<8x512xf32>
    %105 = tpu.matmul %104, %102, %cst_69 {dimension_numbers = #tpu.dot_dimension_numbers<[1], [0], [0], [1], [0, 0, 1, 1], [], []>} : vector<8x8xbf16>, vector<8x512xbf16>, vector<8x512xf32> -> vector<8x512xf32>
    %106 = arith.addf %99, %105 : vector<8x512xf32>
    %107 = vector.extract_strided_slice %68 {offsets = [0, 9], sizes = [8, 503], strides = [1, 1]} : vector<8x512xbf16> to vector<8x503xbf16>
    %cst_70 = arith.constant 0.000000e+00 : bf16
    %108 = vector.broadcast %cst_70 : bf16 to vector<8x9xbf16>
    %109 = tpu.concatenate %107, %108 in 1 : vector<8x503xbf16>, vector<8x9xbf16> -> vector<8x512xbf16>
    %c6_71 = arith.constant 6 : index
    %c0_72 = arith.constant 0 : index
    %c0_73 = arith.constant 0 : index
    %110 = vector.load %arg4[%c6_71, %c0_72, %c0_73] : memref<9x8x8xbf16, #tpu.memory_space<vmem>>, vector<1x8x8xbf16>
    %111 = vector.shape_cast %110 : vector<1x8x8xbf16> to vector<8x8xbf16>
    %cst_74 = arith.constant dense<0.000000e+00> : vector<8x512xf32>
    %112 = tpu.matmul %111, %109, %cst_74 {dimension_numbers = #tpu.dot_dimension_numbers<[1], [0], [0], [1], [0, 0, 1, 1], [], []>} : vector<8x8xbf16>, vector<8x512xbf16>, vector<8x512xf32> -> vector<8x512xf32>
    %113 = arith.addf %106, %112 : vector<8x512xf32>
    %114 = vector.extract_strided_slice %68 {offsets = [0, 10], sizes = [8, 502], strides = [1, 1]} : vector<8x512xbf16> to vector<8x502xbf16>
    %cst_75 = arith.constant 0.000000e+00 : bf16
    %115 = vector.broadcast %cst_75 : bf16 to vector<8x10xbf16>
    %116 = tpu.concatenate %114, %115 in 1 : vector<8x502xbf16>, vector<8x10xbf16> -> vector<8x512xbf16>
    %c7_76 = arith.constant 7 : index
    %c0_77 = arith.constant 0 : index
    %c0_78 = arith.constant 0 : index
    %117 = vector.load %arg4[%c7_76, %c0_77, %c0_78] : memref<9x8x8xbf16, #tpu.memory_space<vmem>>, vector<1x8x8xbf16>
    %118 = vector.shape_cast %117 : vector<1x8x8xbf16> to vector<8x8xbf16>
    %cst_79 = arith.constant dense<0.000000e+00> : vector<8x512xf32>
    %119 = tpu.matmul %118, %116, %cst_79 {dimension_numbers = #tpu.dot_dimension_numbers<[1], [0], [0], [1], [0, 0, 1, 1], [], []>} : vector<8x8xbf16>, vector<8x512xbf16>, vector<8x512xf32> -> vector<8x512xf32>
    %120 = arith.addf %113, %119 : vector<8x512xf32>
    %121 = vector.extract_strided_slice %68 {offsets = [0, 11], sizes = [8, 501], strides = [1, 1]} : vector<8x512xbf16> to vector<8x501xbf16>
    %cst_80 = arith.constant 0.000000e+00 : bf16
    %122 = vector.broadcast %cst_80 : bf16 to vector<8x11xbf16>
    %123 = tpu.concatenate %121, %122 in 1 : vector<8x501xbf16>, vector<8x11xbf16> -> vector<8x512xbf16>
    %c8_81 = arith.constant 8 : index
    %c0_82 = arith.constant 0 : index
    %c0_83 = arith.constant 0 : index
    %124 = vector.load %arg4[%c8_81, %c0_82, %c0_83] : memref<9x8x8xbf16, #tpu.memory_space<vmem>>, vector<1x8x8xbf16>
    %125 = vector.shape_cast %124 : vector<1x8x8xbf16> to vector<8x8xbf16>
    %cst_84 = arith.constant dense<0.000000e+00> : vector<8x512xf32>
    %126 = tpu.matmul %125, %123, %cst_84 {dimension_numbers = #tpu.dot_dimension_numbers<[1], [0], [0], [1], [0, 0, 1, 1], [], []>} : vector<8x8xbf16>, vector<8x512xbf16>, vector<8x512xf32> -> vector<8x512xf32>
    %127 = arith.addf %120, %126 : vector<8x512xf32>
    %c0_85 = arith.constant 0 : index
    %c0_86 = arith.constant 0 : index
    %128 = vector.load %arg5[%c0_85, %c0_86] : memref<8x1xf32, #tpu.memory_space<vmem>>, vector<8x1xf32>
    %129 = vector.broadcast %128 : vector<8x1xf32> to vector<8x512xf32>
    %130 = arith.addf %127, %129 : vector<8x512xf32>
    %131 = arith.extf %0 : vector<8x512xbf16> to vector<8x512xf32>
    %132 = arith.addf %130, %131 : vector<8x512xf32>
    %cst_87 = arith.constant 0.000000e+00 : f32
    %133 = vector.broadcast %cst_87 : f32 to vector<8x512xf32>
    %134 = arith.maximumf %132, %133 : vector<8x512xf32>
    %135 = vector.broadcast %1 : vector<1x512xf32> to vector<8x512xf32>
    %136 = arith.mulf %134, %135 : vector<8x512xf32>
    %137 = arith.truncf %136 : vector<8x512xf32> to vector<8x512xbf16>
    %c0_88 = arith.constant 0 : index
    %c0_89 = arith.constant 0 : index
    %138 = vector.load %arg7[%c0_88, %c0_89] : memref<8x512xbf16, #tpu.memory_space<vmem>>, vector<8x512xbf16>
    tpu.vector_store %arg7[%c0_88, %c0_89], %137 {strides = array<i32>} : memref<8x512xbf16, #tpu.memory_space<vmem>>, vector<8x512xbf16>,
    return
  }
  func.func @transform_0(%arg0: i32) -> (i32, i32) {
    %c0_i32 = arith.constant 0 : i32
    %c0_i32_0 = arith.constant 0 : i32
    return %c0_i32, %arg0 : i32, i32
  }
  func.func @transform_1(%arg0: i32) -> (i32, i32, i32) {
    %c0_i32 = arith.constant 0 : i32
    %c0_i32_0 = arith.constant 0 : i32
    %c0_i32_1 = arith.constant 0 : i32
    %c0_i32_2 = arith.constant 0 : i32
    return %c0_i32, %c0_i32_0, %c0_i32_1 : i32, i32, i32
  }
  func.func @transform_2(%arg0: i32) -> (i32, i32) {
    %c0_i32 = arith.constant 0 : i32
    %c0_i32_0 = arith.constant 0 : i32
    %c0_i32_1 = arith.constant 0 : i32
    return %c0_i32, %c0_i32_0 : i32, i32
  }
  func.func @transform_3(%arg0: i32) -> (i32, i32, i32) {
    %c0_i32 = arith.constant 0 : i32
    %c0_i32_0 = arith.constant 0 : i32
    %c0_i32_1 = arith.constant 0 : i32
    %c0_i32_2 = arith.constant 0 : i32
    return %c0_i32, %c0_i32_0, %c0_i32_1 : i32, i32, i32
  }
  func.func @transform_4(%arg0: i32) -> (i32, i32) {
    %c0_i32 = arith.constant 0 : i32
    %c0_i32_0 = arith.constant 0 : i32
    %c0_i32_1 = arith.constant 0 : i32
    return %c0_i32, %c0_i32_0 : i32, i32
  }
  func.func @transform_5(%arg0: i32) -> (i32, i32) {
    %c0_i32 = arith.constant 0 : i32
    %c0_i32_0 = arith.constant 0 : i32
    return %c0_i32, %arg0 : i32, i32
  }
  func.func @transform_6(%arg0: i32) -> (i32, i32) {
    %c0_i32 = arith.constant 0 : i32
    %c0_i32_0 = arith.constant 0 : i32
    return %c0_i32, %arg0 : i32, i32
  }
}

</mosaic_0001>

<bundles_post_ra>
// kernel: spatial_reb_forward.3
= control target key start
LH: loop header
LB: loop body
LE: loop exit
PB: predicated region body
PF: predicated region fallthrough
CT: control target
= control target key end

     0   :  { %s1612_s15 = smov 0   ;;  %s1614_s16 = smov 0   ;;  %s1821_s0 = inlined_call_operand.vmem [shape: bf16[4,4,1024], index: 0, kind: input, shape index: {}]   ;;  %s1822_s1 = inlined_call_operand.vmem [shape: bf16[9,8,4], index: 1, kind: input, shape index: {}]   ;;  %s1823_s2 = inlined_call_operand.vmem [shape: f32[8,1], index: 2, kind: input, shape index: {}]   ;;  %s1824_s3 = inlined_call_operand.vmem [shape: f32[1,1024], index: 3, kind: input, shape index: {}]   ;;  %s1825_s4 = inlined_call_operand.vmem [shape: bf16[8,1024], index: 4, kind: output, shape index: {}]  }
   0x1   :  { %s1616_s17 = smov 0  }
   0x2 LB: > { %s1458_s18 = sadd.s32 4294967295, %s1580_s17   ;;  %s1629_s19 = sadd.s32 1, %s1580_s17   ;;  %s1580_s17 = sphi %s1616_s17, %s1828_s17   ;;  %s1576_s16 = sphi %s1614_s16, %s1827_s16   ;;  %s1572_s15 = sphi %s1612_s15, %s1826_s15  }
   0x3   : > { %s18_s20 = ssub.s32 %s1580_s17, %s1629_s19  ;;  %s21_s21 = sadd.s32 1, %s1576_s16 }
   0x4   : > { %p19_p0 = scmp.eq.s32.totalorder %s18_s20, 0  ;;  %p28_p1 = scmp.ne.s32.totalorder %s1576_s16, %s1572_s15 }
   0x5   : > { %p29_p2 = scmp.eq.s32.totalorder %s1580_s17, 0  ;;  %p1461_p4 = scmp.ge.s32.totalorder %s1580_s17, 2 }
   0x6   : > { %s1638_s22 = scalar_select %p19_p0, %s1576_s16, %s21_s21  }
   0x7   : > { %p30_p3 = por %p29_p2, %p28_p1  ;;  %154 = sbr.rel (%p1461_p4) target bundleno = 21 (0x15), region = 24 }
   0xe   : > { %157 = sbr.rel (!%p30_p3) target bundleno = 21 (0x15), region = 28  ;;  %s159_s23 = sand.u32 (%p30_p3), 1, %s1576_s16  }
   0xf   : > { %s1521_s24 = sshll.u32 (%p30_p3), %s1580_s17, 3  ;;  %s1462_s25 = sshll.u32 (%p30_p3), %s159_s23, 5 }
  0x10   : > { %s164_s28 = scalar_lea.vmem (%p30_p3), %s1821_s0, %s1521_s24  ;;  %s161_s29 = scalar_lea.vmem (%p30_p3), [#allocation2], %s1462_s25 }
  0x11   : > { %v198_v0 = vld [vmem:[%s164_s28] sm:$0xff] (%p30_p3)  ;;  %v200_v1 = vld [vmem:[%s164_s28 + $0x10] sm:$0xff] (%p30_p3) }
  0x12   : > { %v202_v2 = vld [vmem:[%s164_s28 + $0x20] sm:$0xff] (%p30_p3)  ;;  %199 = vst [vmem:[%s161_s29] sm:$0xff] (%p30_p3), %v198_v0  ;;  %201 = vst [vmem:[%s161_s29 + $0x8] sm:$0xff] (%p30_p3), %v200_v1  ;;  %v204_v3 = vld [vmem:[%s164_s28 + $0x30] sm:$0xff] (%p30_p3) }
  0x13   : > { %203 = vst [vmem:[%s161_s29 + $0x10] sm:$0xff] (%p30_p3), %v202_v2  ;;  %205 = vst [vmem:[%s161_s29 + $0x18] sm:$0xff] (%p30_p3), %v204_v3 }
  0x15 PF: > { %p1465_p5 = scmp.ge.s32.totalorder %s1580_s17, 1  ;;  %p218_p6 = scmp.lt.s32.totalorder %s1580_s17, 3 }
  0x17   : > { %p219_p7 = pnand %p1465_p5, %p218_p6 }
  0x18   : > { %s225_s30 = sand.u32 (!%p219_p7), 1, %s1572_s15   ;;  %v282_v4 = vlaneseq (!%p219_p7)  ;;  %v1582_v5 = vmov (!%p219_p7), 1983009808   ;;  %v1583_v7 = vmov (!%p219_p7), 0   ;;  %vm299_vm0 = vcmask (!%p219_p7), 1041408   ;;  %s1584_s7 = smov (!%p219_p7), 127  }
  0x19   : > { %222 = sbr.rel (%p219_p7) target bundleno = 427 (0x1ab), region = 70  ;;  %s1466_s5 = sshll.u32 (!%p219_p7), %s225_s30, 5  ;;  %v280_v6 = vunpack.c.l.s4 (!%p219_p7), %v1582_v5  ;;  %344 = vmatprep.mubr.bf16.mxu0 (!%p219_p7), %v1583_v7  ;;  %385 = vmatprep.mubr.bf16.mxu1 (!%p219_p7), %v1583_v7  ;;  %v1473_v34 = vld [vmem:[%s1822_s1 + $0x4] sm:$0xf] (!%p219_p7)  ;;  %vm295_vm1 = vcmask (!%p219_p7), 31744   ;;  %vm517_vm2 = vcmask (!%p219_p7), 1039360  }
  0x1a   : > { %v1651_v8 = vshrl.u32 (!%p219_p7), %v282_v4, 7  ;;  %1553 = vset.pattern.permute.xlu0 (!%p219_p7), %v1583_v7  ;;  %s227_s6 = scalar_lea.vmem (!%p219_p7), [#allocation2], %s1466_s5  ;;  %v274_v38 = vld [vmem:[%s1822_s1] sm:$0xf] (!%p219_p7)  ;;  %s1585_s12 = smov (!%p219_p7), 118   ;;  %vm992_vm3 = vcmask (!%p219_p7), 965632  }
  0x1b   : > { %v267_v9 = vld [vmem:[%s227_s6] sm:$0xff] (!%p219_p7)  ;;  %v281_v10 = vunpack.c.0.s8 (!%p219_p7), %v280_v6  ;;  %v1470_v11 = vld [vmem:[%s227_s6 + $0x8] sm:$0xff] (!%p219_p7)  ;;  %v1471_v17 = vld [vmem:[%s227_s6 + $0x10] sm:$0xff] (!%p219_p7)  ;;  %s1586_s13 = smov (!%p219_p7), 117   ;;  %vm1224_vm4 = vcmask (!%p219_p7), 957440   ;;  %s1467_s9 = sshll.u32 (!%p219_p7), %s1458_s18, 2 }
  0x1c   : > { %v395_v12 = vcombine.high (!%p219_p7), %v267_v9, %v267_v9  ;;  %v278_v13 = vcombine.high (!%p219_p7), %v1470_v11, %v1470_v11  ;;  %v1472_v24 = vld [vmem:[%s227_s6 + $0x18] sm:$0xff] (!%p219_p7)  ;;  %v630_v26 = vcombine.high (!%p219_p7), %v1471_v17, %v1471_v17  ;;  %v1333_v39 = vld [vmem:[%s1823_s2] sm:$0xff] (!%p219_p7)  ;;  %v1482_v50 = vld [vmem:[%s1822_s1 + $0x8] sm:$0xf] (!%p219_p7)  ;;  %p256_p8 = scmp.lt.s32.totalorder (!%p219_p7), %s1467_s9, 7 }
  0x1d   : > { %v284_v14 = vsub.s32 (!%p219_p7), %v281_v10, %v1651_v8  ;;  %v751_v29 = vcombine.high (!%p219_p7), %v1472_v24, %v1472_v24  ;;  %v1487_v59 = vld [vmem:[%s1822_s1 + $0xc] sm:$0xf] (!%p219_p7)  ;;  %v1492_v6 = vld [vmem:[%s1822_s1 + $0x10] sm:$0xf] (!%p219_p7) }
  0x1f   : > { %v402_v15 = vrot.slane (!%p219_p7), %v267_v9, %v284_v14  ;;  %v409_v16 = vrot.slane (!%p219_p7), %v395_v12, %v284_v14  ;;  %v285_v18 = vrot.slane (!%p219_p7), %v1470_v11, %v284_v14  ;;  %v292_v19 = vrot.slane (!%p219_p7), %v278_v13, %v284_v14 }
  0x20   : > { %v1657_v25 = vrot.slane %v1471_v17, %v284_v14  ;;  %v1667_v31 = vrot.slane %v1472_v24, %v284_v14  ;;  %v1669_v32 = vrot.slane %v751_v29, %v284_v14  ;;  %v644_v33 = vrot.slane %v630_v26, %v284_v14  ;;  %s1830_s9 = smov (!%p256_p8, %s1467_s9), 7 }
  0x21   : > { %509 = vrot.lane.b32.xlu0 %v402_v15, %s1584_s7  ;;  %513 = vrot.lane.b32.xlu1 %v409_v16, %s1584_s7  ;;  %v410_v20 = vcombine.high %v402_v15, %v402_v15  ;;  %v411_v21 = vcombine.high %v409_v16, %v409_v16  ;;  %v293_v22 = vcombine.high %v285_v18, %v285_v18  ;;  %v301_v27 = vsel %vm299_vm0, %v285_v18, 0  ;;  %s258_s10 = scalar_lea.vmem %s1824_s3, %s1830_s9  ;;  %s1469_s11 = sshll.u32 %s1830_s9, 2 }
  0x22   : > { %v294_v23 = vcombine.high %v292_v19, %v292_v19  ;;  %v307_v28 = vsel %vm299_vm0, %v292_v19, 0  ;;  %v645_v30 = vcombine.high %v1657_v25, %v1657_v25  ;;  %v416_v35 = vsel %vm299_vm0, %v402_v15, 0  ;;  %s264_s14 = scalar_lea.vmem %s1825_s4, %s1469_s11 }
  0x23   : > { %1474 = vmatprep.subr.msk.bf16.mxu0 %vm299_vm0, %v293_v22  ;;  %v422_v36 = vsel %vm299_vm0, %v409_v16, 0  ;;  %v646_v37 = vcombine.high %v644_v33, %v644_v33  ;;  %v651_v51 = vsel %vm299_vm0, %v1657_v25, 0  ;;  %v657_v52 = vsel %vm299_vm0, %v644_v33, 0 }
  0x24   : > { %1476 = vmatprep.subr.msk.bf16.mxu1 %vm299_vm0, %v294_v23  ;;  %313 = vmatpush1.bf16.msra.mxu0 %v301_v27  ;;  %v766_v55 = vcombine.high %v1667_v31, %v1667_v31  ;;  %v767_v56 = vcombine.high %v1669_v32, %v1669_v32  ;;  %v772_v60 = vsel %vm299_vm0, %v1667_v31, 0  ;;  %v778_v61 = vsel %vm299_vm0, %v1669_v32, 0 }
  0x25   : > { %511 = vrot.lane.b32.xlu0 %v410_v20, %s1584_s7  ;;  %515 = vrot.lane.b32.xlu1 %v411_v21, %s1584_s7 }
  0x26   : > { %354 = vmatpush1.bf16.msra.mxu1 %v307_v28  ;;  %1478 = vmatprep.subr.msk.bf16.mxu0 %vm299_vm0, %v410_v20  ;;  %v1502_v28 = vld [vmem:[%s1822_s1 + $0x18] sm:$0xf] }
  0x27   : > { %1480 = vmatprep.subr.msk.bf16.mxu1 %vm299_vm0, %v411_v21  ;;  %1475 = vmatmul.mubr.msk.bf16.vlgmr.msra.gmra.mrb[0].mxu0 %vm295_vm1, %v1473_v34 }
  0x28   : > { %428 = vmatpush1.bf16.msra.mxu0 %v416_v35  ;;  %459 = vmatprep.mubr.bf16.mxu0 %v1583_v7 }
  0x29   : > { %869 = vrot.lane.b32.xlu0 %v1657_v25, %s1584_s7  ;;  %871 = vrot.lane.b32.xlu1 %v645_v30, %s1584_s7 }
  0x2a   : > { %1477 = vmatmul.mubr.msk.bf16.vlgmr.msra.gmra.mrb[0].mxu1 %vm295_vm1, %v1473_v34 }
  0x2b   : > { %469 = vmatpush1.bf16.msra.mxu1 %v422_v36  ;;  %500 = vmatprep.mubr.bf16.mxu1 %v1583_v7 }
  0x2d   : > { %873 = vrot.lane.b32.xlu0 %v644_v33, %s1584_s7  ;;  %875 = vrot.lane.b32.xlu1 %v646_v37, %s1584_s7 }
  0x2f   : > { %1479 = vmatmul.mubr.msk.bf16.vlgmr.msra.gmra.mrb[4].mxu0 %vm295_vm1, %v274_v38 }
  0x30   : > { %573 = vmatprep.mubr.bf16.mxu0 %v1583_v7 }
  0x31   : > { %984 = vrot.lane.b32.xlu0 %v402_v15, %s1585_s12  ;;  %986 = vrot.lane.b32.xlu1 %v410_v20, %s1585_s12 }
  0x32   : > { %1481 = vmatmul.mubr.msk.bf16.vlgmr.msra.gmra.mrb[4].mxu1 %vm295_vm1, %v274_v38 }
  0x33   : > { %614 = vmatprep.mubr.bf16.mxu1 %v1583_v7 }
  0x35   : > { %988 = vrot.lane.b32.xlu0 %v409_v16, %s1585_s12  ;;  %990 = vrot.lane.b32.xlu1 %v411_v21, %s1585_s12 }
  0x39   : > { %1101 = vrot.lane.b32.xlu0 %v285_v18, %s1585_s12  ;;  %1103 = vrot.lane.b32.xlu1 %v293_v22, %s1585_s12 }
  0x3d   : > { %1105 = vrot.lane.b32.xlu0 %v292_v19, %s1585_s12  ;;  %1107 = vrot.lane.b32.xlu1 %v294_v23, %s1585_s12  ;;  %v1497_v19 = vld [vmem:[%s1822_s1 + $0x14] sm:$0xf] }
  0x41   : > { %1216 = vrot.lane.b32.xlu0 %v402_v15, %s1586_s13  ;;  %1218 = vrot.lane.b32.xlu1 %v410_v20, %s1586_s13 }
  0x45   : > { %1220 = vrot.lane.b32.xlu0 %v409_v16, %s1586_s13  ;;  %1222 = vrot.lane.b32.xlu1 %v411_v21, %s1586_s13 }
  0x49   : > { %1336 = vperm.xlu0 %1553, %v1333_v39  }
  0x93   : > { %v510_v40 = vpop.permute.xlu0 %509  ;;  %v514_v41 = vpop.permute.xlu1 %513 }
  0x97   : > { %v512_v42 = vpop.permute.xlu0 %511  ;;  %v516_v43 = vpop.permute.xlu1 %515 }
  0x98   : > { %v518_v44 = vsel %vm517_vm2, %v510_v40, %v512_v42  ;;  %v519_v45 = vsel %vm517_vm2, %v512_v42, %v514_v41  ;;  %v520_v46 = vsel %vm517_vm2, %v514_v41, %v516_v43  ;;  %v524_v47 = vsel %vm517_vm2, %v516_v43, 0  ;;  %v1512_v40 = vld [vmem:[%s1822_s1 + $0x20] sm:$0xf] }
  0x99   : > { %v531_v48 = vsel %vm299_vm0, %v518_v44, 0  ;;  %v537_v49 = vsel %vm299_vm0, %v520_v46, 0  ;;  %1483 = vmatprep.subr.msk.bf16.mxu0 %vm299_vm0, %v519_v45  ;;  %1485 = vmatprep.subr.msk.bf16.mxu1 %vm299_vm0, %v524_v47 }
  0x9a   : > { %542 = vmatpush1.bf16.msra.mxu0 %v531_v48  ;;  %583 = vmatpush1.bf16.msra.mxu1 %v537_v49 }
  0x9b   : > { %1488 = vmatprep.subr.msk.bf16.mxu0 %vm299_vm0, %v645_v30  ;;  %1490 = vmatprep.subr.msk.bf16.mxu1 %vm299_vm0, %v646_v37  ;;  %v870_v53 = vpop.permute.xlu0 %869  ;;  %v872_v54 = vpop.permute.xlu1 %871  ;;  %v1507_v37 = vld [vmem:[%s1822_s1 + $0x1c] sm:$0xf] }
  0x9c   : > { %v877_v4 = vsel %vm517_vm2, %v870_v53, %v872_v54 }
  0x9d   : > { %1484 = vmatmul.mubr.msk.bf16.vlgmr.msra.gmra.mrb[8].mxu0 %vm295_vm1, %v1482_v50  ;;  %1486 = vmatmul.mubr.msk.bf16.vlgmr.msra.gmra.mrb[8].mxu1 %vm295_vm1, %v1482_v50  ;;  %v888_v9 = vsel %vm299_vm0, %v877_v4, 0 }
  0x9e   : > { %663 = vmatpush1.bf16.msra.mxu0 %v651_v51  ;;  %704 = vmatpush1.bf16.msra.mxu1 %v657_v52 }
  0x9f   : > { %694 = vmatprep.mubr.bf16.mxu0 %v1583_v7  ;;  %735 = vmatprep.mubr.bf16.mxu1 %v1583_v7  ;;  %v874_v57 = vpop.permute.xlu0 %873  ;;  %v876_v58 = vpop.permute.xlu1 %875 }
  0xa0   : > { %1493 = vmatprep.subr.msk.bf16.mxu0 %vm299_vm0, %v766_v55  ;;  %1495 = vmatprep.subr.msk.bf16.mxu1 %vm299_vm0, %v767_v56  ;;  %v878_v0 = vsel %vm517_vm2, %v872_v54, %v874_v57  ;;  %v881_v1 = vsel %vm517_vm2, %v876_v58, 0  ;;  %v879_v5 = vsel %vm517_vm2, %v874_v57, %v876_v58 }
  0xa1   : > { %v894_v10 = vsel %vm299_vm0, %v879_v5, 0 }
  0xa3   : > { %v985_v62 = vpop.permute.xlu0 %984  ;;  %v987_v63 = vpop.permute.xlu1 %986 }
  0xa4   : > { %v993_v17 = vsel %vm992_vm3, %v985_v62, %v987_v63 }
  0xa5   : > { %1489 = vmatmul.mubr.msk.bf16.vlgmr.msra.gmra.mrb[12].mxu0 %vm295_vm1, %v1487_v59  ;;  %1491 = vmatmul.mubr.msk.bf16.vlgmr.msra.gmra.mrb[12].mxu1 %vm295_vm1, %v1487_v59  ;;  %v1005_v20 = vsel %vm299_vm0, %v993_v17, 0 }
  0xa6   : > { %784 = vmatpush1.bf16.msra.mxu0 %v772_v60  ;;  %825 = vmatpush1.bf16.msra.mxu1 %v778_v61 }
  0xa7   : > { %815 = vmatprep.mubr.bf16.mxu0 %v1583_v7  ;;  %856 = vmatprep.mubr.bf16.mxu1 %v1583_v7  ;;  %v989_v2 = vpop.permute.xlu0 %988  ;;  %v991_v3 = vpop.permute.xlu1 %990 }
  0xa8   : > { %1498 = vmatprep.subr.msk.bf16.mxu0 %vm299_vm0, %v878_v0  ;;  %1500 = vmatprep.subr.msk.bf16.mxu1 %vm299_vm0, %v881_v1  ;;  %v994_v13 = vsel %vm992_vm3, %v987_v63, %v989_v2  ;;  %v998_v14 = vsel %vm992_vm3, %v991_v3, 0  ;;  %v995_v18 = vsel %vm992_vm3, %v989_v2, %v991_v3 }
  0xa9   : > { %v1011_v21 = vsel %vm299_vm0, %v995_v18, 0 }
  0xab   : > { %v1102_v11 = vpop.permute.xlu0 %1101  ;;  %v1104_v12 = vpop.permute.xlu1 %1103 }
  0xac   : > { %v1109_v26 = vsel %vm992_vm3, %v1102_v11, %v1104_v12 }
  0xad   : > { %1494 = vmatmul.mubr.msk.bf16.vlgmr.msra.gmra.mrb[16].mxu0 %vm295_vm1, %v1492_v6  ;;  %1496 = vmatmul.mubr.msk.bf16.vlgmr.msra.gmra.mrb[16].mxu1 %vm295_vm1, %v1492_v6  ;;  %v1120_v31 = vsel %vm299_vm0, %v1109_v26, 0 }
  0xae   : > { %899 = vmatpush1.bf16.msra.mxu0 %v888_v9  ;;  %940 = vmatpush1.bf16.msra.mxu1 %v894_v10 }
  0xaf   : > { %930 = vmatprep.mubr.bf16.mxu0 %v1583_v7  ;;  %971 = vmatprep.mubr.bf16.mxu1 %v1583_v7  ;;  %v1106_v15 = vpop.permute.xlu0 %1105  ;;  %v1108_v16 = vpop.permute.xlu1 %1107 }
  0xb0   : > { %1503 = vmatprep.subr.msk.bf16.mxu0 %vm299_vm0, %v994_v13  ;;  %1505 = vmatprep.subr.msk.bf16.mxu1 %vm299_vm0, %v998_v14  ;;  %v1110_v24 = vsel %vm992_vm3, %v1104_v12, %v1106_v15  ;;  %v1113_v25 = vsel %vm992_vm3, %v1108_v16, 0  ;;  %v1111_v27 = vsel %vm992_vm3, %v1106_v15, %v1108_v16 }
  0xb1   : > { %v1126_v32 = vsel %vm299_vm0, %v1111_v27, 0 }
  0xb3   : > { %v1217_v22 = vpop.permute.xlu0 %1216  ;;  %v1219_v23 = vpop.permute.xlu1 %1218 }
  0xb4   : > { %v1225_v35 = vsel %vm1224_vm4, %v1217_v22, %v1219_v23 }
  0xb5   : > { %1499 = vmatmul.mubr.msk.bf16.vlgmr.msra.gmra.mrb[20].mxu0 %vm295_vm1, %v1497_v19  ;;  %1501 = vmatmul.mubr.msk.bf16.vlgmr.msra.gmra.mrb[20].mxu1 %vm295_vm1, %v1497_v19  ;;  %v1237_v38 = vsel %vm299_vm0, %v1225_v35, 0 }
  0xb6   : > { %1016 = vmatpush1.bf16.msra.mxu0 %v1005_v20  ;;  %1057 = vmatpush1.bf16.msra.mxu1 %v1011_v21 }
  0xb7   : > { %1047 = vmatprep.mubr.bf16.mxu0 %v1583_v7  ;;  %1088 = vmatprep.mubr.bf16.mxu1 %v1583_v7  ;;  %v1221_v29 = vpop.permute.xlu0 %1220  ;;  %v1223_v30 = vpop.permute.xlu1 %1222 }
  0xb8   : > { %1508 = vmatprep.subr.msk.bf16.mxu0 %vm299_vm0, %v1110_v24  ;;  %1510 = vmatprep.subr.msk.bf16.mxu1 %vm299_vm0, %v1113_v25  ;;  %v1226_v33 = vsel %vm1224_vm4, %v1219_v23, %v1221_v29  ;;  %v1230_v34 = vsel %vm1224_vm4, %v1223_v30, 0  ;;  %v1227_v36 = vsel %vm1224_vm4, %v1221_v29, %v1223_v30 }
  0xb9   : > { %v1243_v39 = vsel %vm299_vm0, %v1227_v36, 0 }
  0xbd   : > { %1504 = vmatmul.mubr.msk.bf16.vlgmr.msra.gmra.mrb[24].mxu0 %vm295_vm1, %v1502_v28  ;;  %1506 = vmatmul.mubr.msk.bf16.vlgmr.msra.gmra.mrb[24].mxu1 %vm295_vm1, %v1502_v28 }
  0xbe   : > { %1131 = vmatpush1.bf16.msra.mxu0 %v1120_v31  ;;  %1172 = vmatpush1.bf16.msra.mxu1 %v1126_v32 }
  0xbf   : > { %1162 = vmatprep.mubr.bf16.mxu0 %v1583_v7  ;;  %1203 = vmatprep.mubr.bf16.mxu1 %v1583_v7 }
  0xc0   : > { %1513 = vmatprep.subr.msk.bf16.mxu0 %vm299_vm0, %v1226_v33  ;;  %1515 = vmatprep.subr.msk.bf16.mxu1 %vm299_vm0, %v1230_v34 }
  0xc5   : > { %1509 = vmatmul.mubr.msk.bf16.vlgmr.msra.gmra.mrb[28].mxu0 %vm295_vm1, %v1507_v37  ;;  %1511 = vmatmul.mubr.msk.bf16.vlgmr.msra.gmra.mrb[28].mxu1 %vm295_vm1, %v1507_v37 }
  0xc6   : > { %1248 = vmatpush1.bf16.msra.mxu0 %v1237_v38  ;;  %1289 = vmatpush1.bf16.msra.mxu1 %v1243_v39 }
  0xc7   : > { %1279 = vmatprep.mubr.bf16.mxu0 %v1583_v7  ;;  %1320 = vmatprep.mubr.bf16.mxu1 %v1583_v7 }
  0xcd   : > { %1514 = vmatmul.mubr.msk.bf16.vlgmr.msra.gmra.mrb[32].mxu0 %vm295_vm1, %v1512_v40  ;;  %1516 = vmatmul.mubr.msk.bf16.vlgmr.msra.gmra.mrb[32].mxu1 %vm295_vm1, %v1512_v40 }
  0xfa   : > { %v346_v41 = vpop.f32.mrb[0].mxu0 }
  0xfb   : > { %v348_v43 = vpop.f32.mrb[1].mxu0 }
  0xfc   : > { %v350_v45 = vpop.f32.mrb[2].mxu0 }
  0xfd   : > { %v387_v42 = vpop.f32.mrb[0].mxu1  ;;  %v351_v47 = vpop.f32.mrb[3].mxu0 }
  0xfe   : > { %v389_v44 = vpop.f32.mrb[1].mxu1 }
  0xff   : > { %v391_v46 = vpop.f32.mrb[2].mxu1 }
 0x100   : > { %v392_v48 = vpop.f32.mrb[3].mxu1 }
 0x102   : > { %v461_v49 = vpop.f32.mrb[4].mxu0 }
 0x103   : > { %v462_v51 = vadd.f32 %v461_v49, %v346_v41  ;;  %v463_v7 = vpop.f32.mrb[5].mxu0 }
 0x104   : > { %v464_v54 = vadd.f32 %v463_v7, %v348_v43  ;;  %v465_v56 = vpop.f32.mrb[6].mxu0 }
 0x105   : > { %v502_v50 = vpop.f32.mrb[4].mxu1  ;;  %v466_v58 = vpop.f32.mrb[7].mxu0 }
 0x106   : > { %v503_v52 = vadd.f32 %v502_v50, %v387_v42  ;;  %v504_v53 = vpop.f32.mrb[5].mxu1 }
 0x107   : > { %v505_v55 = vadd.f32 %v504_v53, %v389_v44  ;;  %v506_v57 = vpop.f32.mrb[6].mxu1 }
 0x108   : > { %v507_v59 = vpop.f32.mrb[7].mxu1 }
 0x170   : > { %v575_v60 = vpop.f32.mrb[8].mxu0  ;;  %v616_v61 = vpop.f32.mrb[8].mxu1 }
 0x171   : > { %v623_v62 = vadd.f32 %v575_v60, %v462_v51  ;;  %v625_v63 = vadd.f32 %v616_v61, %v503_v52  ;;  %v577_v0 = vpop.f32.mrb[9].mxu0  ;;  %v618_v1 = vpop.f32.mrb[9].mxu1 }
 0x172   : > { %v624_v2 = vadd.f32 %v577_v0, %v464_v54  ;;  %v626_v3 = vadd.f32 %v618_v1, %v505_v55  ;;  %v579_v4 = vpop.f32.mrb[10].mxu0  ;;  %v620_v5 = vpop.f32.mrb[10].mxu1 }
 0x173   : > { %v580_v6 = vpop.f32.mrb[11].mxu0  ;;  %v621_v9 = vpop.f32.mrb[11].mxu1  ;;  %v1347_v5 = vsub.s32 0, %v1651_v8 }
 0x174   : > { %v1355_v6 = vsub.s32 2, %v1651_v8  ;;  %v1343_v9 = vld [vmem:[%s258_s10] sm:$0xf] }
 0x178   : > { %v696_v10 = vpop.f32.mrb[12].mxu0  ;;  %v737_v11 = vpop.f32.mrb[12].mxu1 }
 0x179   : > { %v744_v12 = vadd.f32 %v696_v10, %v623_v62  ;;  %v746_v13 = vadd.f32 %v737_v11, %v625_v63  ;;  %v698_v14 = vpop.f32.mrb[13].mxu0  ;;  %v739_v15 = vpop.f32.mrb[13].mxu1  ;;  %v1351_v10 = vsub.s32 1, %v1651_v8  ;;  %v1359_v11 = vsub.s32 3, %v1651_v8 }
 0x17a   : > { %v745_v16 = vadd.f32 %v698_v14, %v624_v2  ;;  %v747_v17 = vadd.f32 %v739_v15, %v626_v3  ;;  %v700_v18 = vpop.f32.mrb[14].mxu0  ;;  %v741_v19 = vpop.f32.mrb[14].mxu1 }
 0x17b   : > { %v701_v20 = vpop.f32.mrb[15].mxu0  ;;  %v742_v21 = vpop.f32.mrb[15].mxu1  ;;  %v1348_v19 = vrot.slane %v1343_v9, %v1347_v5 }
 0x17c   : > { %v1356_v20 = vrot.slane %v1343_v9, %v1355_v6 }
 0x180   : > { %v817_v22 = vpop.f32.mrb[16].mxu0  ;;  %v858_v23 = vpop.f32.mrb[16].mxu1 }
 0x181   : > { %v865_v24 = vadd.f32 %v817_v22, %v744_v12  ;;  %v867_v25 = vadd.f32 %v858_v23, %v746_v13  ;;  %v819_v26 = vpop.f32.mrb[17].mxu0  ;;  %v860_v27 = vpop.f32.mrb[17].mxu1  ;;  %v1352_v23 = vrot.slane %v1343_v9, %v1351_v10 }
 0x182   : > { %v866_v28 = vadd.f32 %v819_v26, %v745_v16  ;;  %v868_v29 = vadd.f32 %v860_v27, %v747_v17  ;;  %v821_v30 = vpop.f32.mrb[18].mxu0  ;;  %v862_v31 = vpop.f32.mrb[18].mxu1 }
 0x183   : > { %v822_v32 = vpop.f32.mrb[19].mxu0  ;;  %v863_v33 = vpop.f32.mrb[19].mxu1 }
 0x184   : > { %v1337_v12 = vpop.permute.xlu0 %1336 }
 0x188   : > { %v932_v34 = vpop.f32.mrb[20].mxu0  ;;  %v973_v35 = vpop.f32.mrb[20].mxu1 }
 0x189   : > { %v980_v36 = vadd.f32 %v932_v34, %v865_v24  ;;  %v982_v37 = vadd.f32 %v973_v35, %v867_v25  ;;  %v934_v38 = vpop.f32.mrb[21].mxu0  ;;  %v975_v39 = vpop.f32.mrb[21].mxu1  ;;  %v1360_v24 = vrot.slane %v1343_v9, %v1359_v11 }
 0x18a   : > { %v981_v40 = vadd.f32 %v934_v38, %v866_v28  ;;  %v983_v41 = vadd.f32 %v975_v39, %v868_v29  ;;  %v936_v42 = vpop.f32.mrb[22].mxu0  ;;  %v977_v43 = vpop.f32.mrb[22].mxu1 }
 0x18b   : > { %v937_v44 = vpop.f32.mrb[23].mxu0  ;;  %v978_v45 = vpop.f32.mrb[23].mxu1 }
 0x190   : > { %v1049_v46 = vpop.f32.mrb[24].mxu0  ;;  %v1090_v47 = vpop.f32.mrb[24].mxu1 }
 0x191   : > { %v1097_v48 = vadd.f32 %v1049_v46, %v980_v36  ;;  %v1099_v49 = vadd.f32 %v1090_v47, %v982_v37  ;;  %v1051_v50 = vpop.f32.mrb[25].mxu0  ;;  %v1092_v51 = vpop.f32.mrb[25].mxu1 }
 0x192   : > { %v1098_v7 = vadd.f32 %v1051_v50, %v981_v40  ;;  %v1100_v52 = vadd.f32 %v1092_v51, %v983_v41  ;;  %v1053_v53 = vpop.f32.mrb[26].mxu0  ;;  %v1094_v54 = vpop.f32.mrb[26].mxu1 }
 0x193   : > { %v1054_v55 = vpop.f32.mrb[27].mxu0  ;;  %v1095_v56 = vpop.f32.mrb[27].mxu1 }
 0x198   : > { %v1164_v57 = vpop.f32.mrb[28].mxu0  ;;  %v1205_v58 = vpop.f32.mrb[28].mxu1 }
 0x199   : > { %v1212_v59 = vadd.f32 %v1164_v57, %v1097_v48  ;;  %v1214_v60 = vadd.f32 %v1205_v58, %v1099_v49  ;;  %v1166_v61 = vpop.f32.mrb[29].mxu0  ;;  %v1207_v62 = vpop.f32.mrb[29].mxu1 }
 0x19a   : > { %v1213_v63 = vadd.f32 %v1166_v61, %v1098_v7  ;;  %v1215_v0 = vadd.f32 %v1207_v62, %v1100_v52  ;;  %v1168_v1 = vpop.f32.mrb[30].mxu0  ;;  %v1209_v2 = vpop.f32.mrb[30].mxu1 }
 0x19b   : > { %v1169_v3 = vpop.f32.mrb[31].mxu0  ;;  %v1210_v4 = vpop.f32.mrb[31].mxu1 }
 0x1a0   : > { %v1281_v13 = vpop.f32.mrb[32].mxu0  ;;  %v1322_v14 = vpop.f32.mrb[32].mxu1 }
 0x1a1   : > { %v1329_v15 = vadd.f32 %v1281_v13, %v1212_v59  ;;  %v1331_v16 = vadd.f32 %v1322_v14, %v1214_v60  ;;  %v1283_v17 = vpop.f32.mrb[33].mxu0  ;;  %v1324_v18 = vpop.f32.mrb[33].mxu1 }
 0x1a2   : > { %v1330_v21 = vadd.f32 %v1283_v17, %v1213_v63  ;;  %v1332_v22 = vadd.f32 %v1324_v18, %v1215_v0  ;;  %v1285_v25 = vpop.f32.mrb[34].mxu0  ;;  %v1326_v26 = vpop.f32.mrb[34].mxu1 }
 0x1a3   : > { %v1339_v27 = vadd.f32 %v1337_v12, %v1329_v15  ;;  %v1341_v28 = vadd.f32 %v1337_v12, %v1331_v16  ;;  %v1286_v29 = vpop.f32.mrb[35].mxu0  ;;  %v1327_v8 = vpop.f32.mrb[35].mxu1 }
 0x1a4   : > { %v1340_v30 = vadd.f32 %v1337_v12, %v1330_v21  ;;  %v1342_v31 = vadd.f32 %v1337_v12, %v1332_v22 }
 0x1a5   : > { %v1365_v32 = vmul.f32 %v1348_v19, %v1339_v27  ;;  %v1367_v33 = vmul.f32 %v1356_v20, %v1341_v28 }
 0x1a6   : > { %v1366_v34 = vmul.f32 %v1352_v23, %v1340_v30  ;;  %v1368_v35 = vmul.f32 %v1360_v24, %v1342_v31 }
 0x1a8   : > { %v1522_v36 = vpack.c.bf16 %v1366_v34, %v1365_v32  ;;  %v1523_v37 = vpack.c.bf16 %v1368_v35, %v1367_v33 }
 0x1aa   : > { %1385 = vst [vmem:[%s264_s14] sm:$0xff] %v1522_v36  ;;  %1386 = vst [vmem:[%s264_s14 + $0x8] sm:$0xff] %v1523_v37 }
 0x1ab PF: > { %p11_p9 = scmp.ge.s32.totalorder %s1629_s19, 4   ;;  %s1826_s15 = smov %s1576_s16 }
 0x1ac   : > { %s1827_s16 = smov %s1638_s22  ;;  %s1828_s17 = smov %s1629_s19 }
 0x1ad   :  { %13 = sbr.rel (!%p11_p9) target bundleno = 2 (0x2), region = 123 }

// kernel: spatial_reb_forward.4
= control target key start
LH: loop header
LB: loop body
LE: loop exit
PB: predicated region body
PF: predicated region fallthrough
CT: control target
= control target key end

     0   :  { %s2675_s21 = smov 0   ;;  %s3146_s0 = inlined_call_operand.vmem [shape: bf16[8,1024], index: 0, kind: input, shape index: {}]   ;;  %s3147_s1 = inlined_call_operand.vmem [shape: bf16[9,8,8], index: 1, kind: input, shape index: {}]   ;;  %s3148_s2 = inlined_call_operand.vmem [shape: f32[8,1], index: 2, kind: input, shape index: {}]   ;;  %s3149_s3 = inlined_call_operand.vmem [shape: bf16[9,8,8], index: 3, kind: input, shape index: {}]   ;;  %s3150_s4 = inlined_call_operand.vmem [shape: f32[8,1], index: 4, kind: input, shape index: {}]   ;;  %s3151_s5 = inlined_call_operand.vmem [shape: f32[1,1024], index: 5, kind: input, shape index: {}]   ;;  %s3152_s6 = inlined_call_operand.vmem [shape: bf16[8,1024], index: 6, kind: output, shape index: {}]  }
   0x1 LB: > { %s2491_s22 = sadd.s32 4294967295, %s2629_s21   ;;  %p2495_p0 = scmp.ge.s32.totalorder %s2629_s21, 1  ;;  %s2629_s21 = sphi %s2675_s21, %s16_s21  }
   0x2   : > { %p223_p1 = scmp.lt.s32.totalorder %s2629_s21, 3 }
   0x4   : > { %p224_p2 = pnand %p2495_p0, %p223_p1 }
   0x5   : > { %s2496_s23 = sshll.u32 (!%p224_p2), %s2491_s22, 2  ;;  %v2631_v0 = vmov (!%p224_p2), 0   ;;  %s2632_s28 = smov (!%p224_p2), 10   ;;  %v1321_v7 = vld [vmem:[%s3148_s2] sm:$0xff] (!%p224_p2)  ;;  %vm313_vm0 = vcmask (!%p224_p2), 80896   ;;  %vm326_vm1 = vcmask (!%p224_p2), 1043456  }
   0x6   : > { %227 = sbr.rel (%p224_p2) target bundleno = 847 (0x34f), region = 44  ;;  %p258_p3 = scmp.lt.s32.totalorder (!%p224_p2), %s2496_s23, 7  ;;  %370 = vmatprep.mubr.bf16.mxu0 (!%p224_p2), %v2631_v0  ;;  %411 = vmatprep.mubr.bf16.mxu1 (!%p224_p2), %v2631_v0  ;;  %vm296_vm2 = vcmask (!%p224_p2), 89088   ;;  %v2505_v18 = vld [vmem:[%s3147_s1 + $0x4] sm:$0xf] (!%p224_p2)  ;;  %vm322_vm3 = vcmask (!%p224_p2), 64512  }
   0x7   : > { %2616 = vset.pattern.permute.xlu0 (!%p224_p2), %v2631_v0  ;;  %s2633_s29 = smov (!%p224_p2), 11   ;;  %s2634_s30 = smov (!%p224_p2), 9   ;;  %vm524_vm4 = vcmask (!%p224_p2), 72704   ;;  %v304_v29 = vld [vmem:[%s3147_s1] sm:$0xf] (!%p224_p2)  ;;  %vm641_vm5 = vcmask (!%p224_p2), 7168  }
   0x8   : > { %s2635_s7 = smov (!%p224_p2), 1   ;;  %s2636_s8 = smov (!%p224_p2), 127   ;;  %v2514_v40 = vld [vmem:[%s3147_s1 + $0x8] sm:$0xf] (!%p224_p2)  ;;  %v2519_v51 = vld [vmem:[%s3147_s1 + $0xc] sm:$0xf] (!%p224_p2) }
   0x9   : > { %s2637_s9 = smov (!%p224_p2), 119   ;;  %s2638_s10 = smov (!%p224_p2), 118   ;;  %vm861_vm6 = vcmask (!%p224_p2), 1039360   ;;  %v2524_v62 = vld [vmem:[%s3147_s1 + $0x10] sm:$0xf] (!%p224_p2)  ;;  %vm978_vm7 = vcmask (!%p224_p2), 973824  }
   0xa   : > { %s2639_s11 = smov (!%p224_p2), 117   ;;  %vm1095_vm8 = vcmask (!%p224_p2), 965632   ;;  %vm1212_vm9 = vcmask (!%p224_p2), 957440  }
   0xd   : > { %s3154_s23 = smov (!%p258_p3, %s2496_s23), 7 }
   0xe   : > { %s2497_s24 = sshll.u32 %s3154_s23, 2  ;;  %s266_s25 = scalar_lea.vmem %s3151_s5, %s3154_s23 }
   0xf   : > { %s2693_s27 = scalar_lea.vmem %s3146_s0, %s2497_s24 }
  0x10   : > { %v276_v1 = vld [vmem:[%s2693_s27 + $0x8] sm:$0xff]  ;;  %v275_v2 = vld [vmem:[%s2693_s27] sm:$0xff] }
  0x11   : > { %v2698_v3 = vcombine.low %v276_v1, %v276_v1  ;;  %v2700_v4 = vcombine.low %v275_v2, %v275_v2  ;;  %v2706_v5 = vcombine.high %v276_v1, %v276_v1  ;;  %v2708_v6 = vcombine.high %v275_v2, %v275_v2 }
  0x13   : > { %309 = vrot.lane.b32.xlu1 %v2698_v3, %s2632_s28  ;;  %305 = vrot.lane.b32.xlu0 %v2700_v4, %s2632_s28  ;;  %v756_v53 = vsel %vm326_vm1, %v2700_v4, 0  ;;  %v762_v54 = vsel %vm326_vm1, %v2698_v3, 0 }
  0x17   : > { %311 = vrot.lane.b32.xlu1 %v2706_v5, %s2632_s28  ;;  %307 = vrot.lane.b32.xlu0 %v2708_v6, %s2632_s28 }
  0x1b   : > { %290 = vrot.lane.b32.xlu1 %v2708_v6, %s2633_s29  ;;  %288 = vrot.lane.b32.xlu0 %v2700_v4, %s2633_s29 }
  0x1f   : > { %294 = vrot.lane.b32.xlu1 %v2706_v5, %s2633_s29  ;;  %292 = vrot.lane.b32.xlu0 %v2698_v3, %s2633_s29 }
  0x23   : > { %518 = vrot.lane.b32.xlu1 %v2708_v6, %s2634_s30  ;;  %516 = vrot.lane.b32.xlu0 %v2700_v4, %s2634_s30 }
  0x27   : > { %522 = vrot.lane.b32.xlu1 %v2706_v5, %s2634_s30  ;;  %520 = vrot.lane.b32.xlu0 %v2698_v3, %s2634_s30 }
  0x2b   : > { %635 = vrot.lane.b32.xlu1 %v2708_v6, %s2635_s7  ;;  %633 = vrot.lane.b32.xlu0 %v2700_v4, %s2635_s7 }
  0x2f   : > { %639 = vrot.lane.b32.xlu1 %v2706_v5, %s2635_s7  ;;  %637 = vrot.lane.b32.xlu0 %v2698_v3, %s2635_s7 }
  0x33   : > { %853 = vrot.lane.b32.xlu0 %v2700_v4, %s2636_s8  ;;  %855 = vrot.lane.b32.xlu1 %v2708_v6, %s2636_s8 }
  0x37   : > { %857 = vrot.lane.b32.xlu0 %v2698_v3, %s2636_s8  ;;  %859 = vrot.lane.b32.xlu1 %v2706_v5, %s2636_s8 }
  0x3b   : > { %970 = vrot.lane.b32.xlu0 %v2700_v4, %s2637_s9  ;;  %972 = vrot.lane.b32.xlu1 %v2708_v6, %s2637_s9 }
  0x3f   : > { %974 = vrot.lane.b32.xlu0 %v2698_v3, %s2637_s9  ;;  %976 = vrot.lane.b32.xlu1 %v2706_v5, %s2637_s9 }
  0x43   : > { %1087 = vrot.lane.b32.xlu0 %v2700_v4, %s2638_s10  ;;  %1089 = vrot.lane.b32.xlu1 %v2708_v6, %s2638_s10 }
  0x47   : > { %1091 = vrot.lane.b32.xlu0 %v2698_v3, %s2638_s10  ;;  %1093 = vrot.lane.b32.xlu1 %v2706_v5, %s2638_s10 }
  0x4b   : > { %1204 = vrot.lane.b32.xlu0 %v2700_v4, %s2639_s11  ;;  %1206 = vrot.lane.b32.xlu1 %v2708_v6, %s2639_s11 }
  0x4f   : > { %1208 = vrot.lane.b32.xlu0 %v2698_v3, %s2639_s11  ;;  %1210 = vrot.lane.b32.xlu1 %v2706_v5, %s2639_s11 }
  0x53   : > { %1324 = vperm.xlu0 %2616, %v1321_v7  }
  0x85   : > { %v310_v8 = vpop.permute.xlu1 %309  ;;  %v306_v9 = vpop.permute.xlu0 %305 }
  0x86   : > { %v319_v10 = vsel %vm313_vm0, 0, %v306_v9 }
  0x87   : > { %v327_v16 = vsel %vm326_vm1, %v319_v10, 0  ;;  %v2529_v10 = vld [vmem:[%s3147_s1 + $0x14] sm:$0xf] }
  0x89   : > { %v312_v11 = vpop.permute.xlu1 %311  ;;  %v308_v12 = vpop.permute.xlu0 %307 }
  0x8a   : > { %v314_v13 = vsel %vm313_vm0, %v306_v9, %v308_v12  ;;  %v316_v14 = vsel %vm313_vm0, %v310_v8, %v312_v11  ;;  %v315_v15 = vsel %vm313_vm0, %v308_v12, %v310_v8 }
  0x8b   : > { %2506 = vmatprep.subr.msk.bf16.mxu0 %vm326_vm1, %v314_v13  ;;  %2508 = vmatprep.subr.msk.bf16.mxu1 %vm326_vm1, %v316_v14  ;;  %v333_v17 = vsel %vm326_vm1, %v315_v15, 0 }
  0x8c   : > { %339 = vmatpush1.bf16.msra.mxu0 %v327_v16  ;;  %380 = vmatpush1.bf16.msra.mxu1 %v333_v17 }
  0x8d   : > { %v291_v19 = vpop.permute.xlu1 %290  ;;  %v289_v20 = vpop.permute.xlu0 %288 }
  0x8e   : > { %v297_v21 = vsel %vm296_vm2, %v289_v20, %v291_v19  ;;  %v303_v22 = vsel %vm296_vm2, 0, %v289_v20 }
  0x8f   : > { %v423_v23 = vsel %vm326_vm1, %v303_v22, 0  ;;  %2507 = vmatmul.mubr.msk.bf16.vlgmr.msra.gmra.mrb[0].mxu0 %vm322_vm3, %v2505_v18  ;;  %2509 = vmatmul.mubr.msk.bf16.vlgmr.msra.gmra.mrb[0].mxu1 %vm322_vm3, %v2505_v18 }
  0x90   : > { %2510 = vmatprep.subr.msk.bf16.mxu0 %vm326_vm1, %v297_v21  ;;  %466 = vmatprep.mubr.bf16.mxu0 %v2631_v0  ;;  %v2534_v21 = vld [vmem:[%s3147_s1 + $0x18] sm:$0xf] }
  0x91   : > { %v295_v24 = vpop.permute.xlu1 %294  ;;  %v293_v25 = vpop.permute.xlu0 %292  ;;  %435 = vmatpush1.bf16.msra.mxu0 %v423_v23  ;;  %507 = vmatprep.mubr.bf16.mxu1 %v2631_v0 }
  0x92   : > { %v298_v26 = vsel %vm296_vm2, %v291_v19, %v293_v25  ;;  %v299_v27 = vsel %vm296_vm2, %v293_v25, %v295_v24 }
  0x93   : > { %v429_v28 = vsel %vm326_vm1, %v298_v26, 0  ;;  %2512 = vmatprep.subr.msk.bf16.mxu1 %vm326_vm1, %v299_v27 }
  0x94   : > { %476 = vmatpush1.bf16.msra.mxu1 %v429_v28 }
  0x95   : > { %v519_v30 = vpop.permute.xlu1 %518  ;;  %v517_v31 = vpop.permute.xlu0 %516 }
  0x96   : > { %v525_v32 = vsel %vm524_vm4, %v517_v31, %v519_v30  ;;  %v530_v33 = vsel %vm524_vm4, 0, %v517_v31 }
  0x97   : > { %v536_v34 = vsel %vm326_vm1, %v530_v33, 0  ;;  %2511 = vmatmul.mubr.msk.bf16.vlgmr.msra.gmra.mrb[4].mxu0 %vm322_vm3, %v304_v29  ;;  %2513 = vmatmul.mubr.msk.bf16.vlgmr.msra.gmra.mrb[4].mxu1 %vm322_vm3, %v304_v29 }
  0x98   : > { %2515 = vmatprep.subr.msk.bf16.mxu0 %vm326_vm1, %v525_v32  ;;  %579 = vmatprep.mubr.bf16.mxu0 %v2631_v0  ;;  %v2539_v32 = vld [vmem:[%s3147_s1 + $0x1c] sm:$0xf] }
  0x99   : > { %v523_v35 = vpop.permute.xlu1 %522  ;;  %v521_v36 = vpop.permute.xlu0 %520  ;;  %548 = vmatpush1.bf16.msra.mxu0 %v536_v34  ;;  %620 = vmatprep.mubr.bf16.mxu1 %v2631_v0 }
  0x9a   : > { %v526_v37 = vsel %vm524_vm4, %v519_v30, %v521_v36  ;;  %v527_v38 = vsel %vm524_vm4, %v521_v36, %v523_v35  ;;  %v2544_v35 = vld [vmem:[%s3147_s1 + $0x20] sm:$0xf] }
  0x9b   : > { %v542_v39 = vsel %vm326_vm1, %v526_v37, 0  ;;  %2517 = vmatprep.subr.msk.bf16.mxu1 %vm326_vm1, %v527_v38 }
  0x9c   : > { %589 = vmatpush1.bf16.msra.mxu1 %v542_v39 }
  0x9d   : > { %v636_v41 = vpop.permute.xlu1 %635  ;;  %v634_v42 = vpop.permute.xlu0 %633 }
  0x9e   : > { %v642_v43 = vsel %vm641_vm5, %v634_v42, %v636_v41  ;;  %v647_v44 = vsel %vm641_vm5, 0, %v634_v42 }
  0x9f   : > { %v653_v45 = vsel %vm326_vm1, %v647_v44, 0  ;;  %2516 = vmatmul.mubr.msk.bf16.vlgmr.msra.gmra.mrb[8].mxu0 %vm322_vm3, %v2514_v40  ;;  %2518 = vmatmul.mubr.msk.bf16.vlgmr.msra.gmra.mrb[8].mxu1 %vm322_vm3, %v2514_v40 }
  0xa0   : > { %2520 = vmatprep.subr.msk.bf16.mxu0 %vm326_vm1, %v642_v43  ;;  %696 = vmatprep.mubr.bf16.mxu0 %v2631_v0 }
  0xa1   : > { %v640_v46 = vpop.permute.xlu1 %639  ;;  %v638_v47 = vpop.permute.xlu0 %637  ;;  %665 = vmatpush1.bf16.msra.mxu0 %v653_v45  ;;  %737 = vmatprep.mubr.bf16.mxu1 %v2631_v0 }
  0xa2   : > { %v643_v48 = vsel %vm641_vm5, %v636_v41, %v638_v47  ;;  %v644_v49 = vsel %vm641_vm5, %v638_v47, %v640_v46  ;;  %2525 = vmatprep.subr.msk.bf16.mxu0 %vm326_vm1, %v2708_v6 }
  0xa3   : > { %v659_v50 = vsel %vm326_vm1, %v643_v48, 0  ;;  %2522 = vmatprep.subr.msk.bf16.mxu1 %vm326_vm1, %v644_v49 }
  0xa4   : > { %706 = vmatpush1.bf16.msra.mxu1 %v659_v50 }
  0xa5   : > { %v854_v52 = vpop.permute.xlu0 %853  ;;  %2527 = vmatprep.subr.msk.bf16.mxu1 %vm326_vm1, %v2706_v5  ;;  %v856_v55 = vpop.permute.xlu1 %855 }
  0xa6   : > { %v862_v58 = vsel %vm861_vm6, %v854_v52, %v856_v55 }
  0xa7   : > { %2521 = vmatmul.mubr.msk.bf16.vlgmr.msra.gmra.mrb[12].mxu0 %vm322_vm3, %v2519_v51  ;;  %2523 = vmatmul.mubr.msk.bf16.vlgmr.msra.gmra.mrb[12].mxu1 %vm322_vm3, %v2519_v51  ;;  %v874_v63 = vsel %vm326_vm1, %v862_v58, 0 }
  0xa8   : > { %768 = vmatpush1.bf16.msra.mxu0 %v756_v53  ;;  %809 = vmatpush1.bf16.msra.mxu1 %v762_v54 }
  0xa9   : > { %v858_v56 = vpop.permute.xlu0 %857  ;;  %799 = vmatprep.mubr.bf16.mxu0 %v2631_v0  ;;  %840 = vmatprep.mubr.bf16.mxu1 %v2631_v0  ;;  %v860_v57 = vpop.permute.xlu1 %859 }
  0xaa   : > { %v863_v59 = vsel %vm861_vm6, %v856_v55, %v858_v56  ;;  %v864_v60 = vsel %vm861_vm6, %v858_v56, %v860_v57  ;;  %v867_v61 = vsel %vm861_vm6, %v860_v57, 0 }
  0xab   : > { %2530 = vmatprep.subr.msk.bf16.mxu0 %vm326_vm1, %v863_v59  ;;  %2532 = vmatprep.subr.msk.bf16.mxu1 %vm326_vm1, %v867_v61  ;;  %v880_v1 = vsel %vm326_vm1, %v864_v60, 0 }
  0xad   : > { %v971_v2 = vpop.permute.xlu0 %970  ;;  %v973_v3 = vpop.permute.xlu1 %972 }
  0xae   : > { %v979_v6 = vsel %vm978_vm7, %v971_v2, %v973_v3 }
  0xaf   : > { %2526 = vmatmul.mubr.msk.bf16.vlgmr.msra.gmra.mrb[16].mxu0 %vm322_vm3, %v2524_v62  ;;  %2528 = vmatmul.mubr.msk.bf16.vlgmr.msra.gmra.mrb[16].mxu1 %vm322_vm3, %v2524_v62  ;;  %v991_v11 = vsel %vm326_vm1, %v979_v6, 0 }
  0xb0   : > { %885 = vmatpush1.bf16.msra.mxu0 %v874_v63  ;;  %926 = vmatpush1.bf16.msra.mxu1 %v880_v1 }
  0xb1   : > { %v975_v4 = vpop.permute.xlu0 %974  ;;  %916 = vmatprep.mubr.bf16.mxu0 %v2631_v0  ;;  %957 = vmatprep.mubr.bf16.mxu1 %v2631_v0  ;;  %v977_v5 = vpop.permute.xlu1 %976 }
  0xb2   : > { %v980_v7 = vsel %vm978_vm7, %v973_v3, %v975_v4  ;;  %v981_v8 = vsel %vm978_vm7, %v975_v4, %v977_v5  ;;  %v984_v9 = vsel %vm978_vm7, %v977_v5, 0 }
  0xb3   : > { %2535 = vmatprep.subr.msk.bf16.mxu0 %vm326_vm1, %v980_v7  ;;  %2537 = vmatprep.subr.msk.bf16.mxu1 %vm326_vm1, %v984_v9  ;;  %v997_v12 = vsel %vm326_vm1, %v981_v8, 0 }
  0xb5   : > { %v1088_v13 = vpop.permute.xlu0 %1087  ;;  %v1090_v14 = vpop.permute.xlu1 %1089 }
  0xb6   : > { %v1096_v17 = vsel %vm1095_vm8, %v1088_v13, %v1090_v14 }
  0xb7   : > { %2531 = vmatmul.mubr.msk.bf16.vlgmr.msra.gmra.mrb[20].mxu0 %vm322_vm3, %v2529_v10  ;;  %2533 = vmatmul.mubr.msk.bf16.vlgmr.msra.gmra.mrb[20].mxu1 %vm322_vm3, %v2529_v10  ;;  %v1108_v22 = vsel %vm326_vm1, %v1096_v17, 0 }
  0xb8   : > { %1002 = vmatpush1.bf16.msra.mxu0 %v991_v11  ;;  %1043 = vmatpush1.bf16.msra.mxu1 %v997_v12 }
  0xb9   : > { %v1092_v15 = vpop.permute.xlu0 %1091  ;;  %1033 = vmatprep.mubr.bf16.mxu0 %v2631_v0  ;;  %1074 = vmatprep.mubr.bf16.mxu1 %v2631_v0  ;;  %v1094_v16 = vpop.permute.xlu1 %1093 }
  0xba   : > { %v1097_v18 = vsel %vm1095_vm8, %v1090_v14, %v1092_v15  ;;  %v1098_v19 = vsel %vm1095_vm8, %v1092_v15, %v1094_v16  ;;  %v1101_v20 = vsel %vm1095_vm8, %v1094_v16, 0 }
  0xbb   : > { %2540 = vmatprep.subr.msk.bf16.mxu0 %vm326_vm1, %v1097_v18  ;;  %2542 = vmatprep.subr.msk.bf16.mxu1 %vm326_vm1, %v1101_v20  ;;  %v1114_v23 = vsel %vm326_vm1, %v1098_v19, 0 }
  0xbd   : > { %v1205_v24 = vpop.permute.xlu0 %1204  ;;  %v1207_v25 = vpop.permute.xlu1 %1206 }
  0xbe   : > { %v1213_v28 = vsel %vm1212_vm9, %v1205_v24, %v1207_v25 }
  0xbf   : > { %2536 = vmatmul.mubr.msk.bf16.vlgmr.msra.gmra.mrb[24].mxu0 %vm322_vm3, %v2534_v21  ;;  %2538 = vmatmul.mubr.msk.bf16.vlgmr.msra.gmra.mrb[24].mxu1 %vm322_vm3, %v2534_v21  ;;  %v1225_v33 = vsel %vm326_vm1, %v1213_v28, 0 }
  0xc0   : > { %1119 = vmatpush1.bf16.msra.mxu0 %v1108_v22  ;;  %1160 = vmatpush1.bf16.msra.mxu1 %v1114_v23 }
  0xc1   : > { %v1209_v26 = vpop.permute.xlu0 %1208  ;;  %1150 = vmatprep.mubr.bf16.mxu0 %v2631_v0  ;;  %1191 = vmatprep.mubr.bf16.mxu1 %v2631_v0  ;;  %v1211_v27 = vpop.permute.xlu1 %1210 }
  0xc2   : > { %v1214_v29 = vsel %vm1212_vm9, %v1207_v25, %v1209_v26  ;;  %v1215_v30 = vsel %vm1212_vm9, %v1209_v26, %v1211_v27  ;;  %v1218_v31 = vsel %vm1212_vm9, %v1211_v27, 0 }
  0xc3   : > { %2545 = vmatprep.subr.msk.bf16.mxu0 %vm326_vm1, %v1214_v29  ;;  %2547 = vmatprep.subr.msk.bf16.mxu1 %vm326_vm1, %v1218_v31  ;;  %v1231_v34 = vsel %vm326_vm1, %v1215_v30, 0 }
  0xc7   : > { %2541 = vmatmul.mubr.msk.bf16.vlgmr.msra.gmra.mrb[28].mxu0 %vm322_vm3, %v2539_v32  ;;  %2543 = vmatmul.mubr.msk.bf16.vlgmr.msra.gmra.mrb[28].mxu1 %vm322_vm3, %v2539_v32 }
  0xc8   : > { %1236 = vmatpush1.bf16.msra.mxu0 %v1225_v33  ;;  %1277 = vmatpush1.bf16.msra.mxu1 %v1231_v34 }
  0xc9   : > { %1267 = vmatprep.mubr.bf16.mxu0 %v2631_v0  ;;  %1308 = vmatprep.mubr.bf16.mxu1 %v2631_v0 }
  0xcf   : > { %2546 = vmatmul.mubr.msk.bf16.vlgmr.msra.gmra.mrb[32].mxu0 %vm322_vm3, %v2544_v35  ;;  %2548 = vmatmul.mubr.msk.bf16.vlgmr.msra.gmra.mrb[32].mxu1 %vm322_vm3, %v2544_v35 }
  0xd0   : > { %1443 = vmatprep.mubr.bf16.mxu0 %v2631_v0  ;;  %1484 = vmatprep.mubr.bf16.mxu1 %v2631_v0 }
 0x162   : > { %v372_v36 = vpop.f32.mrb[0].mxu0  ;;  %v413_v37 = vpop.f32.mrb[0].mxu1 }
 0x163   : > { %v374_v38 = vpop.f32.mrb[1].mxu0  ;;  %v415_v39 = vpop.f32.mrb[1].mxu1 }
 0x164   : > { %v376_v40 = vpop.f32.mrb[2].mxu0  ;;  %v417_v41 = vpop.f32.mrb[2].mxu1 }
 0x165   : > { %v377_v42 = vpop.f32.mrb[3].mxu0  ;;  %v418_v43 = vpop.f32.mrb[3].mxu1 }
 0x16a   : > { %v468_v44 = vpop.f32.mrb[4].mxu0  ;;  %v509_v45 = vpop.f32.mrb[4].mxu1 }
 0x16b   : > { %v469_v46 = vadd.f32 %v468_v44, %v372_v36  ;;  %v510_v47 = vadd.f32 %v509_v45, %v413_v37  ;;  %v470_v48 = vpop.f32.mrb[5].mxu0  ;;  %v511_v49 = vpop.f32.mrb[5].mxu1 }
 0x16c   : > { %v471_v50 = vadd.f32 %v470_v48, %v374_v38  ;;  %v512_v51 = vadd.f32 %v511_v49, %v415_v39  ;;  %v472_v52 = vpop.f32.mrb[6].mxu0  ;;  %v513_v53 = vpop.f32.mrb[6].mxu1 }
 0x16d   : > { %v473_v54 = vpop.f32.mrb[7].mxu0  ;;  %v514_v55 = vpop.f32.mrb[7].mxu1  ;;  %v1336_v53 = vlaneseq }
 0x172   : > { %v581_v56 = vpop.f32.mrb[8].mxu0  ;;  %v622_v57 = vpop.f32.mrb[8].mxu1 }
 0x173   : > { %v629_v58 = vadd.f32 %v581_v56, %v469_v46  ;;  %v631_v59 = vadd.f32 %v622_v57, %v510_v47  ;;  %v583_v60 = vpop.f32.mrb[9].mxu0  ;;  %v624_v61 = vpop.f32.mrb[9].mxu1 }
 0x174   : > { %v630_v62 = vadd.f32 %v583_v60, %v471_v50  ;;  %v632_v63 = vadd.f32 %v624_v61, %v512_v51  ;;  %v585_v1 = vpop.f32.mrb[10].mxu0  ;;  %v626_v2 = vpop.f32.mrb[10].mxu1 }
 0x175   : > { %v586_v3 = vpop.f32.mrb[11].mxu0  ;;  %v627_v4 = vpop.f32.mrb[11].mxu1 }
 0x176   : > { %v1337_v3 = vshrl.u32 %v1336_v53, 7 }
 0x178   : > { %v1338_v4 = vsub.s32 0, %v1337_v3 }
 0x17a   : > { %v698_v5 = vpop.f32.mrb[12].mxu0  ;;  %v739_v6 = vpop.f32.mrb[12].mxu1 }
 0x17b   : > { %v746_v7 = vadd.f32 %v698_v5, %v629_v58  ;;  %v748_v8 = vadd.f32 %v739_v6, %v631_v59  ;;  %v700_v9 = vpop.f32.mrb[13].mxu0  ;;  %v741_v10 = vpop.f32.mrb[13].mxu1  ;;  %v1346_v5 = vsub.s32 2, %v1337_v3 }
 0x17c   : > { %v747_v11 = vadd.f32 %v700_v9, %v630_v62  ;;  %v749_v12 = vadd.f32 %v741_v10, %v632_v63  ;;  %v702_v13 = vpop.f32.mrb[14].mxu0  ;;  %v743_v14 = vpop.f32.mrb[14].mxu1  ;;  %v277_v9 = vld [vmem:[%s266_s25] sm:$0xf] }
 0x17d   : > { %v703_v15 = vpop.f32.mrb[15].mxu0  ;;  %v744_v16 = vpop.f32.mrb[15].mxu1  ;;  %v1342_v14 = vsub.s32 1, %v1337_v3 }
 0x17e   : > { %v1325_v6 = vpop.permute.xlu0 %1324 }
 0x182   : > { %v801_v17 = vpop.f32.mrb[16].mxu0  ;;  %v842_v18 = vpop.f32.mrb[16].mxu1 }
 0x183   : > { %v849_v19 = vadd.f32 %v801_v17, %v746_v7  ;;  %v851_v20 = vadd.f32 %v842_v18, %v748_v8  ;;  %v803_v21 = vpop.f32.mrb[17].mxu0  ;;  %v844_v22 = vpop.f32.mrb[17].mxu1 }
 0x184   : > { %v850_v23 = vadd.f32 %v803_v21, %v747_v11  ;;  %v852_v24 = vadd.f32 %v844_v22, %v749_v12  ;;  %v805_v25 = vpop.f32.mrb[18].mxu0  ;;  %v846_v26 = vpop.f32.mrb[18].mxu1 }
 0x185   : > { %v806_v27 = vpop.f32.mrb[19].mxu0  ;;  %v847_v28 = vpop.f32.mrb[19].mxu1  ;;  %v1350_v25 = vsub.s32 3, %v1337_v3 }
 0x186   : > { %v2916_v27 = vrot.slane %v277_v9, %v1342_v14 }
 0x18a   : > { %v918_v29 = vpop.f32.mrb[20].mxu0  ;;  %v959_v30 = vpop.f32.mrb[20].mxu1 }
 0x18b   : > { %v966_v31 = vadd.f32 %v918_v29, %v849_v19  ;;  %v968_v32 = vadd.f32 %v959_v30, %v851_v20  ;;  %v920_v33 = vpop.f32.mrb[21].mxu0  ;;  %v961_v34 = vpop.f32.mrb[21].mxu1  ;;  %v2912_v19 = vrot.slane %v277_v9, %v1338_v4  ;;  %v2914_v20 = vrot.slane %v277_v9, %v1346_v5 }
 0x18c   : > { %v967_v35 = vadd.f32 %v920_v33, %v850_v23  ;;  %v969_v36 = vadd.f32 %v961_v34, %v852_v24  ;;  %v922_v37 = vpop.f32.mrb[22].mxu0  ;;  %v963_v38 = vpop.f32.mrb[22].mxu1  ;;  %v2920_v34 = vrot.slane %v277_v9, %v1350_v25 }
 0x18d   : > { %v923_v39 = vpop.f32.mrb[23].mxu0  ;;  %v964_v40 = vpop.f32.mrb[23].mxu1 }
 0x192   : > { %v1035_v41 = vpop.f32.mrb[24].mxu0  ;;  %v1076_v42 = vpop.f32.mrb[24].mxu1 }
 0x193   : > { %v1083_v43 = vadd.f32 %v1035_v41, %v966_v31  ;;  %v1085_v44 = vadd.f32 %v1076_v42, %v968_v32  ;;  %v1037_v45 = vpop.f32.mrb[25].mxu0  ;;  %v1078_v46 = vpop.f32.mrb[25].mxu1  ;;  %v2382_v42 = vld [vmem:[%s3150_s4] sm:$0xff] }
 0x194   : > { %v1084_v47 = vadd.f32 %v1037_v45, %v967_v35  ;;  %v1086_v48 = vadd.f32 %v1078_v46, %v969_v36  ;;  %v1039_v49 = vpop.f32.mrb[26].mxu0  ;;  %v1080_v50 = vpop.f32.mrb[26].mxu1 }
 0x195   : > { %v1040_v51 = vpop.f32.mrb[27].mxu0  ;;  %v1081_v52 = vpop.f32.mrb[27].mxu1 }
 0x196   : > { %v2549_v51 = vld [vmem:[%s3149_s3 + $0x4] sm:$0xf] }
 0x19a   : > { %v1152_v54 = vpop.f32.mrb[28].mxu0  ;;  %v1193_v55 = vpop.f32.mrb[28].mxu1 }
 0x19b   : > { %v1200_v56 = vadd.f32 %v1152_v54, %v1083_v43  ;;  %v1202_v57 = vadd.f32 %v1193_v55, %v1085_v44  ;;  %v1154_v58 = vpop.f32.mrb[29].mxu0  ;;  %v1195_v59 = vpop.f32.mrb[29].mxu1 }
 0x19c   : > { %v1201_v60 = vadd.f32 %v1154_v58, %v1084_v47  ;;  %v1203_v61 = vadd.f32 %v1195_v59, %v1086_v48  ;;  %v1156_v62 = vpop.f32.mrb[30].mxu0  ;;  %v1197_v63 = vpop.f32.mrb[30].mxu1 }
 0x19d   : > { %v1157_v1 = vpop.f32.mrb[31].mxu0  ;;  %v1198_v2 = vpop.f32.mrb[31].mxu1  ;;  %v1381_v62 = vld [vmem:[%s3149_s3] sm:$0xf] }
 0x1a2   : > { %v1269_v7 = vpop.f32.mrb[32].mxu0  ;;  %v1310_v8 = vpop.f32.mrb[32].mxu1 }
 0x1a3   : > { %v1317_v10 = vadd.f32 %v1269_v7, %v1200_v56  ;;  %v1319_v11 = vadd.f32 %v1310_v8, %v1202_v57  ;;  %v1271_v12 = vpop.f32.mrb[33].mxu0  ;;  %v1312_v13 = vpop.f32.mrb[33].mxu1 }
 0x1a4   : > { %v1318_v15 = vadd.f32 %v1271_v12, %v1201_v60  ;;  %v1320_v16 = vadd.f32 %v1312_v13, %v1203_v61  ;;  %v1273_v17 = vpop.f32.mrb[34].mxu0  ;;  %v1314_v18 = vpop.f32.mrb[34].mxu1 }
 0x1a5   : > { %v1327_v21 = vadd.f32 %v1325_v6, %v1317_v10  ;;  %v1329_v22 = vadd.f32 %v1325_v6, %v1319_v11  ;;  %v1274_v23 = vpop.f32.mrb[35].mxu0  ;;  %v1315_v24 = vpop.f32.mrb[35].mxu1  ;;  %v2558_v10 = vld [vmem:[%s3149_s3 + $0x8] sm:$0xf] }
 0x1a6   : > { %v1328_v26 = vadd.f32 %v1325_v6, %v1318_v15  ;;  %v1330_v28 = vadd.f32 %v1325_v6, %v1320_v16  ;;  %v2563_v23 = vld [vmem:[%s3149_s3 + $0xc] sm:$0xf] }
 0x1a7   : > { %v1331_v29 = vmax.f32 %v1327_v21, 0.0  ;;  %v1333_v30 = vmax.f32 %v1329_v22, 0.0 }
 0x1a8   : > { %v1332_v31 = vmax.f32 %v1328_v26, 0.0  ;;  %v1334_v35 = vmax.f32 %v1330_v28, 0.0 }
 0x1a9   : > { %v1356_v32 = vmul.f32 %v2912_v19, %v1331_v29  ;;  %v1358_v33 = vmul.f32 %v2914_v20, %v1333_v30 }
 0x1aa   : > { %v1357_v36 = vmul.f32 %v2916_v27, %v1332_v31  ;;  %v1359_v39 = vmul.f32 %v2920_v34, %v1334_v35 }
 0x1ab   : > { %v2923_v37 = vpack.c.bf16 %v1356_v32, %v1356_v32  ;;  %v2925_v38 = vpack.c.bf16 %v1358_v33, %v1358_v33 }
 0x1ac   : > { %v2932_v40 = vpack.c.bf16 %v1357_v36, %v1357_v36  ;;  %v2938_v41 = vpack.c.bf16 %v1359_v39, %v1359_v39  ;;  %v2568_v36 = vld [vmem:[%s3149_s3 + $0x10] sm:$0xf] }
 0x1ad   : > { %1386 = vrot.lane.b32.xlu0 %v2925_v38, %s2632_s28  ;;  %1382 = vrot.lane.b32.xlu1 %v2923_v37, %s2632_s28  ;;  %v1825_v29 = vsel %vm326_vm1, %v2923_v37, 0  ;;  %v1831_v33 = vsel %vm326_vm1, %v2925_v38, 0 }
 0x1b1   : > { %1368 = vrot.lane.b32.xlu0 %v2923_v37, %s2633_s29  ;;  %1384 = vrot.lane.b32.xlu1 %v2932_v40, %s2632_s28 }
 0x1b5   : > { %1372 = vrot.lane.b32.xlu0 %v2925_v38, %s2633_s29  ;;  %1388 = vrot.lane.b32.xlu1 %v2938_v41, %s2632_s28 }
 0x1b9   : > { %1589 = vrot.lane.b32.xlu0 %v2923_v37, %s2634_s30  ;;  %1370 = vrot.lane.b32.xlu1 %v2932_v40, %s2633_s29 }
 0x1bd   : > { %1593 = vrot.lane.b32.xlu0 %v2925_v38, %s2634_s30  ;;  %1374 = vrot.lane.b32.xlu1 %v2938_v41, %s2633_s29  ;;  %s272_s29 = scalar_lea.vmem %s3152_s6, %s2497_s24 }
 0x1c1   : > { %1704 = vrot.lane.b32.xlu0 %v2923_v37, %s2635_s7  ;;  %1591 = vrot.lane.b32.xlu1 %v2932_v40, %s2634_s30 }
 0x1c5   : > { %1708 = vrot.lane.b32.xlu0 %v2925_v38, %s2635_s7  ;;  %1595 = vrot.lane.b32.xlu1 %v2938_v41, %s2634_s30 }
 0x1c9   : > { %1922 = vrot.lane.b32.xlu0 %v2923_v37, %s2636_s8  ;;  %1706 = vrot.lane.b32.xlu1 %v2932_v40, %s2635_s7 }
 0x1cd   : > { %1926 = vrot.lane.b32.xlu0 %v2925_v38, %s2636_s8  ;;  %1710 = vrot.lane.b32.xlu1 %v2938_v41, %s2635_s7 }
 0x1d1   : > { %2037 = vrot.lane.b32.xlu0 %v2923_v37, %s2637_s9  ;;  %1924 = vrot.lane.b32.xlu1 %v2932_v40, %s2636_s8 }
 0x1d5   : > { %2041 = vrot.lane.b32.xlu0 %v2925_v38, %s2637_s9  ;;  %1928 = vrot.lane.b32.xlu1 %v2938_v41, %s2636_s8 }
 0x1d9   : > { %2152 = vrot.lane.b32.xlu0 %v2923_v37, %s2638_s10  ;;  %2039 = vrot.lane.b32.xlu1 %v2932_v40, %s2637_s9 }
 0x1dd   : > { %2156 = vrot.lane.b32.xlu0 %v2925_v38, %s2638_s10  ;;  %2043 = vrot.lane.b32.xlu1 %v2938_v41, %s2637_s9 }
 0x1e1   : > { %2267 = vrot.lane.b32.xlu0 %v2923_v37, %s2639_s11  ;;  %2154 = vrot.lane.b32.xlu1 %v2932_v40, %s2638_s10 }
 0x1e5   : > { %2271 = vrot.lane.b32.xlu0 %v2925_v38, %s2639_s11  ;;  %2158 = vrot.lane.b32.xlu1 %v2938_v41, %s2638_s10 }
 0x1e9   : > { %2385 = vperm.xlu0 %2616, %v2382_v42   ;;  %2269 = vrot.lane.b32.xlu1 %v2932_v40, %s2639_s11 }
 0x1ed   : > { %2273 = vrot.lane.b32.xlu1 %v2938_v41, %s2639_s11 }
 0x21f   : > { %v1387_v43 = vpop.permute.xlu0 %1386  ;;  %v1383_v44 = vpop.permute.xlu1 %1382 }
 0x220   : > { %v1394_v45 = vsel %vm313_vm0, 0, %v1383_v44 }
 0x221   : > { %v1400_v49 = vsel %vm326_vm1, %v1394_v45, 0 }
 0x223   : > { %v1369_v46 = vpop.permute.xlu0 %1368  ;;  %v1385_v47 = vpop.permute.xlu1 %1384 }
 0x224   : > { %v1390_v48 = vsel %vm313_vm0, %v1383_v44, %v1385_v47  ;;  %v1391_v50 = vsel %vm313_vm0, %v1385_v47, %v1387_v43  ;;  %v1380_v56 = vsel %vm296_vm2, 0, %v1369_v46  ;;  %v2573_v47 = vld [vmem:[%s3149_s3 + $0x14] sm:$0xf] }
 0x225   : > { %2550 = vmatprep.subr.msk.bf16.mxu0 %vm326_vm1, %v1390_v48  ;;  %v1406_v55 = vsel %vm326_vm1, %v1391_v50, 0  ;;  %v1496_v60 = vsel %vm326_vm1, %v1380_v56, 0 }
 0x226   : > { %1412 = vmatpush1.bf16.msra.mxu0 %v1400_v49 }
 0x227   : > { %v1373_v52 = vpop.permute.xlu0 %1372  ;;  %v1389_v53 = vpop.permute.xlu1 %1388 }
 0x228   : > { %v1392_v54 = vsel %vm313_vm0, %v1387_v43, %v1389_v53 }
 0x229   : > { %2551 = vmatmul.mubr.msk.bf16.vlgmr.msra.gmra.mrb[36].mxu0 %vm322_vm3, %v2549_v51  ;;  %2552 = vmatprep.subr.msk.bf16.mxu1 %vm326_vm1, %v1392_v54 }
 0x22a   : > { %1453 = vmatpush1.bf16.msra.mxu1 %v1406_v55  ;;  %1539 = vmatprep.mubr.bf16.mxu0 %v2631_v0 }
 0x22b   : > { %v1590_v57 = vpop.permute.xlu0 %1589  ;;  %v1371_v58 = vpop.permute.xlu1 %1370 }
 0x22c   : > { %v1376_v59 = vsel %vm296_vm2, %v1369_v46, %v1371_v58  ;;  %v1377_v61 = vsel %vm296_vm2, %v1371_v58, %v1373_v52  ;;  %v1601_v4 = vsel %vm524_vm4, 0, %v1590_v57  ;;  %v2578_v58 = vld [vmem:[%s3149_s3 + $0x18] sm:$0xf] }
 0x22d   : > { %2553 = vmatmul.mubr.msk.bf16.vlgmr.msra.gmra.mrb[36].mxu1 %vm322_vm3, %v2549_v51  ;;  %2554 = vmatprep.subr.msk.bf16.mxu0 %vm326_vm1, %v1376_v59  ;;  %v1502_v3 = vsel %vm326_vm1, %v1377_v61, 0  ;;  %v1607_v8 = vsel %vm326_vm1, %v1601_v4, 0 }
 0x22e   : > { %1508 = vmatpush1.bf16.msra.mxu0 %v1496_v60  ;;  %1580 = vmatprep.mubr.bf16.mxu1 %v2631_v0 }
 0x22f   : > { %v1594_v63 = vpop.permute.xlu0 %1593  ;;  %v1375_v1 = vpop.permute.xlu1 %1374 }
 0x230   : > { %v1378_v2 = vsel %vm296_vm2, %v1373_v52, %v1375_v1 }
 0x231   : > { %2555 = vmatmul.mubr.msk.bf16.vlgmr.msra.gmra.mrb[40].mxu0 %vm322_vm3, %v1381_v62  ;;  %2556 = vmatprep.subr.msk.bf16.mxu1 %vm326_vm1, %v1378_v2 }
 0x232   : > { %1549 = vmatpush1.bf16.msra.mxu1 %v1502_v3  ;;  %1650 = vmatprep.mubr.bf16.mxu0 %v2631_v0 }
 0x233   : > { %v1705_v5 = vpop.permute.xlu0 %1704  ;;  %v1592_v6 = vpop.permute.xlu1 %1591 }
 0x234   : > { %v1597_v7 = vsel %vm524_vm4, %v1590_v57, %v1592_v6  ;;  %v1598_v9 = vsel %vm524_vm4, %v1592_v6, %v1594_v63  ;;  %v1716_v15 = vsel %vm641_vm5, 0, %v1705_v5 }
 0x235   : > { %2557 = vmatmul.mubr.msk.bf16.vlgmr.msra.gmra.mrb[40].mxu1 %vm322_vm3, %v1381_v62  ;;  %2559 = vmatprep.subr.msk.bf16.mxu0 %vm326_vm1, %v1597_v7  ;;  %v1613_v14 = vsel %vm326_vm1, %v1598_v9, 0  ;;  %v1722_v21 = vsel %vm326_vm1, %v1716_v15, 0 }
 0x236   : > { %1619 = vmatpush1.bf16.msra.mxu0 %v1607_v8  ;;  %1691 = vmatprep.mubr.bf16.mxu1 %v2631_v0 }
 0x237   : > { %v1709_v11 = vpop.permute.xlu0 %1708  ;;  %v1596_v12 = vpop.permute.xlu1 %1595 }
 0x238   : > { %v1599_v13 = vsel %vm524_vm4, %v1594_v63, %v1596_v12 }
 0x239   : > { %2560 = vmatmul.mubr.msk.bf16.vlgmr.msra.gmra.mrb[44].mxu0 %vm322_vm3, %v2558_v10  ;;  %2561 = vmatprep.subr.msk.bf16.mxu1 %vm326_vm1, %v1599_v13 }
 0x23a   : > { %1660 = vmatpush1.bf16.msra.mxu1 %v1613_v14  ;;  %1765 = vmatprep.mubr.bf16.mxu0 %v2631_v0 }
 0x23b   : > { %v1923_v16 = vpop.permute.xlu0 %1922  ;;  %v1707_v17 = vpop.permute.xlu1 %1706 }
 0x23c   : > { %v1712_v18 = vsel %vm641_vm5, %v1705_v5, %v1707_v17  ;;  %v1713_v22 = vsel %vm641_vm5, %v1707_v17, %v1709_v11  ;;  %v2583_v5 = vld [vmem:[%s3149_s3 + $0x1c] sm:$0xf] }
 0x23d   : > { %2562 = vmatmul.mubr.msk.bf16.vlgmr.msra.gmra.mrb[44].mxu1 %vm322_vm3, %v2558_v10  ;;  %2564 = vmatprep.subr.msk.bf16.mxu0 %vm326_vm1, %v1712_v18  ;;  %v1728_v28 = vsel %vm326_vm1, %v1713_v22, 0 }
 0x23e   : > { %1734 = vmatpush1.bf16.msra.mxu0 %v1722_v21  ;;  %1806 = vmatprep.mubr.bf16.mxu1 %v2631_v0 }
 0x23f   : > { %v1927_v24 = vpop.permute.xlu0 %1926  ;;  %2569 = vmatprep.subr.msk.bf16.mxu0 %vm326_vm1, %v2932_v40  ;;  %v1711_v25 = vpop.permute.xlu1 %1710 }
 0x240   : > { %v1714_v26 = vsel %vm641_vm5, %v1709_v11, %v1711_v25  ;;  %v2588_v11 = vld [vmem:[%s3149_s3 + $0x20] sm:$0xf] }
 0x241   : > { %2565 = vmatmul.mubr.msk.bf16.vlgmr.msra.gmra.mrb[48].mxu0 %vm322_vm3, %v2563_v23  ;;  %2566 = vmatprep.subr.msk.bf16.mxu1 %vm326_vm1, %v1714_v26 }
 0x242   : > { %1775 = vmatpush1.bf16.msra.mxu1 %v1728_v28  ;;  %1837 = vmatpush1.bf16.msra.mxu0 %v1825_v29 }
 0x243   : > { %v2038_v30 = vpop.permute.xlu0 %2037  ;;  %2571 = vmatprep.subr.msk.bf16.mxu1 %vm326_vm1, %v2938_v41  ;;  %v1925_v31 = vpop.permute.xlu1 %1924  ;;  %1868 = vmatprep.mubr.bf16.mxu0 %v2631_v0 }
 0x244   : > { %v1931_v32 = vsel %vm861_vm6, %v1925_v31, %v1927_v24  ;;  %v1930_v35 = vsel %vm861_vm6, %v1923_v16, %v1925_v31 }
 0x245   : > { %2567 = vmatmul.mubr.msk.bf16.vlgmr.msra.gmra.mrb[48].mxu1 %vm322_vm3, %v2563_v23  ;;  %2574 = vmatprep.subr.msk.bf16.mxu0 %vm326_vm1, %v1931_v32  ;;  %v1941_v41 = vsel %vm326_vm1, %v1930_v35, 0 }
 0x246   : > { %1878 = vmatpush1.bf16.msra.mxu1 %v1831_v33  ;;  %1909 = vmatprep.mubr.bf16.mxu1 %v2631_v0 }
 0x247   : > { %v2042_v37 = vpop.permute.xlu0 %2041  ;;  %v1929_v39 = vpop.permute.xlu1 %1928 }
 0x248   : > { %v1934_v40 = vsel %vm861_vm6, %v1929_v39, 0  ;;  %v1932_v38 = vsel %vm861_vm6, %v1927_v24, %v1929_v39 }
 0x249   : > { %2570 = vmatmul.mubr.msk.bf16.vlgmr.msra.gmra.mrb[52].mxu0 %vm322_vm3, %v2568_v36  ;;  %2576 = vmatprep.subr.msk.bf16.mxu1 %vm326_vm1, %v1934_v40  ;;  %v1947_v45 = vsel %vm326_vm1, %v1932_v38, 0 }
 0x24a   : > { %1952 = vmatpush1.bf16.msra.mxu0 %v1941_v41  ;;  %1983 = vmatprep.mubr.bf16.mxu0 %v2631_v0 }
 0x24b   : > { %v2153_v42 = vpop.permute.xlu0 %2152  ;;  %v2040_v43 = vpop.permute.xlu1 %2039 }
 0x24c   : > { %v2046_v44 = vsel %vm978_vm7, %v2040_v43, %v2042_v37  ;;  %v2045_v46 = vsel %vm978_vm7, %v2038_v30, %v2040_v43 }
 0x24d   : > { %2572 = vmatmul.mubr.msk.bf16.vlgmr.msra.gmra.mrb[52].mxu1 %vm322_vm3, %v2568_v36  ;;  %2579 = vmatprep.subr.msk.bf16.mxu0 %vm326_vm1, %v2046_v44  ;;  %v2056_v51 = vsel %vm326_vm1, %v2045_v46, 0 }
 0x24e   : > { %1993 = vmatpush1.bf16.msra.mxu1 %v1947_v45  ;;  %2024 = vmatprep.mubr.bf16.mxu1 %v2631_v0 }
 0x24f   : > { %v2157_v48 = vpop.permute.xlu0 %2156  ;;  %v2044_v49 = vpop.permute.xlu1 %2043 }
 0x250   : > { %v2049_v50 = vsel %vm978_vm7, %v2044_v49, 0  ;;  %v2047_v52 = vsel %vm978_vm7, %v2042_v37, %v2044_v49 }
 0x251   : > { %2575 = vmatmul.mubr.msk.bf16.vlgmr.msra.gmra.mrb[56].mxu0 %vm322_vm3, %v2573_v47  ;;  %2581 = vmatprep.subr.msk.bf16.mxu1 %vm326_vm1, %v2049_v50  ;;  %v2062_v55 = vsel %vm326_vm1, %v2047_v52, 0 }
 0x252   : > { %2067 = vmatpush1.bf16.msra.mxu0 %v2056_v51  ;;  %2098 = vmatprep.mubr.bf16.mxu0 %v2631_v0 }
 0x253   : > { %v2155_v53 = vpop.permute.xlu1 %2154  ;;  %v2268_v56 = vpop.permute.xlu0 %2267 }
 0x254   : > { %v2161_v54 = vsel %vm1095_vm8, %v2155_v53, %v2157_v48  ;;  %v2160_v57 = vsel %vm1095_vm8, %v2153_v42, %v2155_v53 }
 0x255   : > { %2577 = vmatmul.mubr.msk.bf16.vlgmr.msra.gmra.mrb[56].mxu1 %vm322_vm3, %v2573_v47  ;;  %2584 = vmatprep.subr.msk.bf16.mxu0 %vm326_vm1, %v2161_v54  ;;  %v2171_v61 = vsel %vm326_vm1, %v2160_v57, 0 }
 0x256   : > { %2108 = vmatpush1.bf16.msra.mxu1 %v2062_v55  ;;  %2139 = vmatprep.mubr.bf16.mxu1 %v2631_v0 }
 0x257   : > { %v2159_v59 = vpop.permute.xlu1 %2158  ;;  %v2272_v63 = vpop.permute.xlu0 %2271 }
 0x258   : > { %v2164_v60 = vsel %vm1095_vm8, %v2159_v59, 0  ;;  %v2162_v62 = vsel %vm1095_vm8, %v2157_v48, %v2159_v59 }
 0x259   : > { %2580 = vmatmul.mubr.msk.bf16.vlgmr.msra.gmra.mrb[60].mxu0 %vm322_vm3, %v2578_v58  ;;  %2586 = vmatprep.subr.msk.bf16.mxu1 %vm326_vm1, %v2164_v60  ;;  %v2177_v3 = vsel %vm326_vm1, %v2162_v62, 0 }
 0x25a   : > { %2182 = vmatpush1.bf16.msra.mxu0 %v2171_v61  ;;  %2213 = vmatprep.mubr.bf16.mxu0 %v2631_v0 }
 0x25b   : > { %v2270_v1 = vpop.permute.xlu1 %2269 }
 0x25c   : > { %v2276_v2 = vsel %vm1212_vm9, %v2270_v1, %v2272_v63  ;;  %v2275_v4 = vsel %vm1212_vm9, %v2268_v56, %v2270_v1 }
 0x25d   : > { %2582 = vmatmul.mubr.msk.bf16.vlgmr.msra.gmra.mrb[60].mxu1 %vm322_vm3, %v2578_v58  ;;  %2589 = vmatprep.subr.msk.bf16.mxu0 %vm326_vm1, %v2276_v2  ;;  %v2286_v8 = vsel %vm326_vm1, %v2275_v4, 0 }
 0x25e   : > { %2223 = vmatpush1.bf16.msra.mxu1 %v2177_v3  ;;  %2254 = vmatprep.mubr.bf16.mxu1 %v2631_v0 }
 0x25f   : > { %v2274_v6 = vpop.permute.xlu1 %2273 }
 0x260   : > { %v2279_v7 = vsel %vm1212_vm9, %v2274_v6, 0  ;;  %v2277_v9 = vsel %vm1212_vm9, %v2272_v63, %v2274_v6 }
 0x261   : > { %2585 = vmatmul.mubr.msk.bf16.vlgmr.msra.gmra.mrb[64].mxu0 %vm322_vm3, %v2583_v5  ;;  %2591 = vmatprep.subr.msk.bf16.mxu1 %vm326_vm1, %v2279_v7  ;;  %v2292_v10 = vsel %vm326_vm1, %v2277_v9, 0 }
 0x262   : > { %2297 = vmatpush1.bf16.msra.mxu0 %v2286_v8  ;;  %2328 = vmatprep.mubr.bf16.mxu0 %v2631_v0 }
 0x265   : > { %2587 = vmatmul.mubr.msk.bf16.vlgmr.msra.gmra.mrb[64].mxu1 %vm322_vm3, %v2583_v5 }
 0x266   : > { %2338 = vmatpush1.bf16.msra.mxu1 %v2292_v10  ;;  %2369 = vmatprep.mubr.bf16.mxu1 %v2631_v0 }
 0x269   : > { %2590 = vmatmul.mubr.msk.bf16.vlgmr.msra.gmra.mrb[68].mxu0 %vm322_vm3, %v2588_v11 }
 0x26d   : > { %2592 = vmatmul.mubr.msk.bf16.vlgmr.msra.gmra.mrb[68].mxu1 %vm322_vm3, %v2588_v11 }
 0x2fc   : > { %v1445_v12 = vpop.f32.mrb[36].mxu0 }
 0x2fd   : > { %v1447_v13 = vpop.f32.mrb[37].mxu0 }
 0x2fe   : > { %v1449_v14 = vpop.f32.mrb[38].mxu0 }
 0x2ff   : > { %v1450_v15 = vpop.f32.mrb[39].mxu0 }
 0x300   : > { %v1486_v16 = vpop.f32.mrb[36].mxu1 }
 0x301   : > { %v1488_v17 = vpop.f32.mrb[37].mxu1 }
 0x302   : > { %v1490_v18 = vpop.f32.mrb[38].mxu1 }
 0x303   : > { %v1491_v21 = vpop.f32.mrb[39].mxu1 }
 0x304   : > { %v1541_v22 = vpop.f32.mrb[40].mxu0 }
 0x305   : > { %v1542_v23 = vadd.f32 %v1541_v22, %v1445_v12  ;;  %v1543_v24 = vpop.f32.mrb[41].mxu0 }
 0x306   : > { %v1544_v25 = vadd.f32 %v1543_v24, %v1447_v13  ;;  %v1545_v26 = vpop.f32.mrb[42].mxu0 }
 0x307   : > { %v1546_v28 = vpop.f32.mrb[43].mxu0 }
 0x308   : > { %v1582_v29 = vpop.f32.mrb[40].mxu1 }
 0x309   : > { %v1583_v0 = vadd.f32 %v1582_v29, %v1486_v16  ;;  %v1584_v30 = vpop.f32.mrb[41].mxu1 }
 0x30a   : > { %v1585_v31 = vadd.f32 %v1584_v30, %v1488_v17  ;;  %v1586_v32 = vpop.f32.mrb[42].mxu1 }
 0x30b   : > { %v1587_v33 = vpop.f32.mrb[43].mxu1 }
 0x30c   : > { %v1652_v35 = vpop.f32.mrb[44].mxu0 }
 0x30d   : > { %v1700_v36 = vadd.f32 %v1652_v35, %v1542_v23  ;;  %v1654_v37 = vpop.f32.mrb[45].mxu0 }
 0x30e   : > { %v1701_v39 = vadd.f32 %v1654_v37, %v1544_v25  ;;  %v1656_v40 = vpop.f32.mrb[46].mxu0 }
 0x30f   : > { %v1657_v41 = vpop.f32.mrb[47].mxu0 }
 0x310   : > { %v1693_v38 = vpop.f32.mrb[44].mxu1 }
 0x311   : > { %v1702_v42 = vadd.f32 %v1693_v38, %v1583_v0  ;;  %v1695_v43 = vpop.f32.mrb[45].mxu1 }
 0x312   : > { %v1703_v44 = vadd.f32 %v1695_v43, %v1585_v31  ;;  %v1697_v45 = vpop.f32.mrb[46].mxu1 }
 0x313   : > { %v1698_v46 = vpop.f32.mrb[47].mxu1 }
 0x314   : > { %v1767_v47 = vpop.f32.mrb[48].mxu0 }
 0x315   : > { %v1815_v48 = vadd.f32 %v1767_v47, %v1700_v36  ;;  %v1769_v49 = vpop.f32.mrb[49].mxu0 }
 0x316   : > { %v1816_v50 = vadd.f32 %v1769_v49, %v1701_v39  ;;  %v1771_v51 = vpop.f32.mrb[50].mxu0  ;;  %v2621_v49 = vld [vmem:[%s2693_s27] sm:$0xff] }
 0x317   : > { %v1772_v52 = vpop.f32.mrb[51].mxu0 }
 0x318   : > { %v1808_v53 = vpop.f32.mrb[48].mxu1  ;;  %v2386_v52 = vpop.permute.xlu0 %2385 }
 0x319   : > { %v1817_v54 = vadd.f32 %v1808_v53, %v1702_v42  ;;  %v1810_v55 = vpop.f32.mrb[49].mxu1 }
 0x31a   : > { %v1818_v56 = vadd.f32 %v1810_v55, %v1703_v44  ;;  %v1812_v57 = vpop.f32.mrb[50].mxu1 }
 0x31b   : > { %v1813_v58 = vpop.f32.mrb[51].mxu1 }
 0x31c   : > { %v1870_v59 = vpop.f32.mrb[52].mxu0 }
 0x31d   : > { %v1918_v60 = vadd.f32 %v1870_v59, %v1815_v48  ;;  %v1872_v61 = vpop.f32.mrb[53].mxu0 }
 0x31e   : > { %v1919_v62 = vadd.f32 %v1872_v61, %v1816_v50  ;;  %v1874_v63 = vpop.f32.mrb[54].mxu0  ;;  %v2392_v50 = vunpack.c.l.bf16 %v2621_v49 }
 0x31f   : > { %v1875_v1 = vpop.f32.mrb[55].mxu0 }
 0x320   : > { %v1911_v2 = vpop.f32.mrb[52].mxu1 }
 0x321   : > { %v1920_v3 = vadd.f32 %v1911_v2, %v1817_v54  ;;  %v1913_v4 = vpop.f32.mrb[53].mxu1  ;;  %v2393_v54 = vunpack.c.h.bf16 %v2621_v49 }
 0x322   : > { %v1921_v5 = vadd.f32 %v1913_v4, %v1818_v56  ;;  %v1915_v6 = vpop.f32.mrb[54].mxu1 }
 0x323   : > { %v1916_v7 = vpop.f32.mrb[55].mxu1 }
 0x324   : > { %v1985_v8 = vpop.f32.mrb[56].mxu0 }
 0x325   : > { %v2033_v9 = vadd.f32 %v1985_v8, %v1918_v60  ;;  %v1987_v10 = vpop.f32.mrb[57].mxu0 }
 0x326   : > { %v2034_v11 = vadd.f32 %v1987_v10, %v1919_v62  ;;  %v1989_v12 = vpop.f32.mrb[58].mxu0  ;;  %v2622_v62 = vld [vmem:[%s2693_s27 + $0x8] sm:$0xff] }
 0x327   : > { %v1990_v13 = vpop.f32.mrb[59].mxu0  ;;  %v2394_v63 = vunpack.c.l.bf16 %v2622_v62  ;;  %v2395_v4 = vunpack.c.h.bf16 %v2622_v62 }
 0x328   : > { %v2026_v14 = vpop.f32.mrb[56].mxu1 }
 0x329   : > { %v2035_v15 = vadd.f32 %v2026_v14, %v1920_v3  ;;  %v2028_v16 = vpop.f32.mrb[57].mxu1 }
 0x32a   : > { %v2036_v17 = vadd.f32 %v2028_v16, %v1921_v5  ;;  %v2030_v18 = vpop.f32.mrb[58].mxu1 }
 0x32b   : > { %v2031_v21 = vpop.f32.mrb[59].mxu1 }
 0x32c   : > { %v2100_v22 = vpop.f32.mrb[60].mxu0 }
 0x32d   : > { %v2148_v23 = vadd.f32 %v2100_v22, %v2033_v9  ;;  %v2102_v24 = vpop.f32.mrb[61].mxu0 }
 0x32e   : > { %v2149_v25 = vadd.f32 %v2102_v24, %v2034_v11  ;;  %v2104_v26 = vpop.f32.mrb[62].mxu0 }
 0x32f   : > { %v2105_v28 = vpop.f32.mrb[63].mxu0 }
 0x330   : > { %v2141_v29 = vpop.f32.mrb[60].mxu1 }
 0x331   : > { %v2150_v0 = vadd.f32 %v2141_v29, %v2035_v15  ;;  %v2143_v30 = vpop.f32.mrb[61].mxu1 }
 0x332   : > { %v2151_v31 = vadd.f32 %v2143_v30, %v2036_v17  ;;  %v2145_v32 = vpop.f32.mrb[62].mxu1 }
 0x333   : > { %v2146_v33 = vpop.f32.mrb[63].mxu1 }
 0x334   : > { %v2215_v35 = vpop.f32.mrb[64].mxu0 }
 0x335   : > { %v2263_v36 = vadd.f32 %v2215_v35, %v2148_v23  ;;  %v2217_v37 = vpop.f32.mrb[65].mxu0 }
 0x336   : > { %v2264_v39 = vadd.f32 %v2217_v37, %v2149_v25  ;;  %v2219_v40 = vpop.f32.mrb[66].mxu0 }
 0x337   : > { %v2220_v41 = vpop.f32.mrb[67].mxu0 }
 0x338   : > { %v2256_v38 = vpop.f32.mrb[64].mxu1 }
 0x339   : > { %v2265_v42 = vadd.f32 %v2256_v38, %v2150_v0  ;;  %v2258_v43 = vpop.f32.mrb[65].mxu1 }
 0x33a   : > { %v2266_v44 = vadd.f32 %v2258_v43, %v2151_v31  ;;  %v2260_v45 = vpop.f32.mrb[66].mxu1 }
 0x33b   : > { %v2261_v46 = vpop.f32.mrb[67].mxu1 }
 0x33c   : > { %v2330_v47 = vpop.f32.mrb[68].mxu0 }
 0x33d   : > { %v2378_v48 = vadd.f32 %v2330_v47, %v2263_v36  ;;  %v2332_v51 = vpop.f32.mrb[69].mxu0 }
 0x33e   : > { %v2379_v53 = vadd.f32 %v2332_v51, %v2264_v39  ;;  %v2334_v55 = vpop.f32.mrb[70].mxu0 }
 0x33f   : > { %v2388_v56 = vadd.f32 %v2386_v52, %v2378_v48  ;;  %v2335_v57 = vpop.f32.mrb[71].mxu0 }
 0x340   : > { %v2389_v58 = vadd.f32 %v2386_v52, %v2379_v53  ;;  %v2371_v59 = vpop.f32.mrb[68].mxu1 }
 0x341   : > { %v2396_v60 = vadd.f32 %v2392_v50, %v2388_v56  ;;  %v2380_v61 = vadd.f32 %v2371_v59, %v2265_v42  ;;  %v2373_v1 = vpop.f32.mrb[69].mxu1 }
 0x342   : > { %v2397_v2 = vadd.f32 %v2393_v54, %v2389_v58  ;;  %v2381_v3 = vadd.f32 %v2373_v1, %v2266_v44  ;;  %v2375_v5 = vpop.f32.mrb[70].mxu1 }
 0x343   : > { %v2400_v6 = vmax.f32 %v2396_v60, 0.0  ;;  %v2390_v7 = vadd.f32 %v2386_v52, %v2380_v61  ;;  %v2376_v8 = vpop.f32.mrb[71].mxu1 }
 0x344   : > { %v2401_v9 = vmax.f32 %v2397_v2, 0.0  ;;  %v2391_v10 = vadd.f32 %v2386_v52, %v2381_v3 }
 0x345   : > { %v2404_v11 = vmul.f32 %v2400_v6, %v2912_v19  ;;  %v2398_v12 = vadd.f32 %v2394_v63, %v2390_v7 }
 0x346   : > { %v2405_v13 = vmul.f32 %v2401_v9, %v2916_v27  ;;  %v2399_v14 = vadd.f32 %v2395_v4, %v2391_v10 }
 0x347   : > { %v2402_v15 = vmax.f32 %v2398_v12, 0.0 }
 0x348   : > { %v2597_v16 = vpack.c.bf16 %v2405_v13, %v2404_v11  ;;  %v2403_v17 = vmax.f32 %v2399_v14, 0.0 }
 0x349   : > { %v2406_v18 = vmul.f32 %v2402_v15, %v2914_v20 }
 0x34a   : > { %2424 = vst [vmem:[%s272_s29] sm:$0xff] %v2597_v16  ;;  %v2407_v21 = vmul.f32 %v2403_v17, %v2920_v34 }
 0x34c   : > { %v2598_v22 = vpack.c.bf16 %v2407_v21, %v2406_v18 }
 0x34e   : > { %2425 = vst [vmem:[%s272_s29 + $0x8] sm:$0xff] %v2598_v22 }
 0x34f PF: > { %s16_s21 = sadd.s32 1, %s2629_s21  }
 0x350   : > { %p13_p4 = scmp.ge.s32.totalorder %s16_s21, 4  }
 0x352   :  { %15 = sbr.rel (!%p13_p4) target bundleno = 1 (0x1), region = 93 }

</bundles_post_ra>
